<compile_context>
chip_gen: v5e
topology: v5e:2x2
jax: 0.10.0
libtpu: 0.0.40
codegen_flags: <defaults>
</compile_context>

<pallas_src>
import functools

import jax
import jax.numpy as jnp
from jax.experimental import pallas as pl
from jax.experimental.pallas import tpu as pltpu


# ---------------------------------------------------------------------------
# elementwise helpers (p is a static Python float hyperparameter)
# ---------------------------------------------------------------------------
def _rho(z, p):
    # torch.pow(Z, p); exact fast path for the default p == 2.
    if p == 2.0:
        return z * z
    # TODO(synk): torch.pow returns NaN for negative bases with fractional p;
    # the clamp below differs from the reference in that degenerate case.
    return jnp.exp(p * jnp.log(jnp.maximum(z, 1e-30)))


def _inv_rho(z, p):
    # torch.pow(Z, 1/p)
    if p == 2.0:
        return jnp.sqrt(z)
    return jnp.exp((1.0 / p) * jnp.log(jnp.maximum(z, 1e-30)))


# ---------------------------------------------------------------------------
# Fused kernel: diffusion loop + classifier epilogue
# ---------------------------------------------------------------------------
def _hypernd_kernel(h_ref, x_ref, dinv_ref, dinva_ref, deinv_ref,
                    w1_ref, b1_ref, ln_g_ref, ln_b_ref, w2_ref, b2_ref,
                    o_ref, *, p, alpha, tol, max_steps, eps):
    h = h_ref[...]          # (N, M) bf16 incidence (0/1, exact in bf16)
    x = x_ref[...]          # (N, F) f32 node features
    dinv = dinv_ref[...]    # (N, 1) f32, 1/sqrt(D)
    dinva = dinva_ref[...]  # (N, 1) f32, (1-alpha)/sqrt(D)   (hoisted)
    deinv = deinv_ref[...]  # (M, 1) f32, 1/DE

    def v2e(z):
        # Xe = ((H^T @ rho(Z / sqrt(D))) / DE)^(1/p)   (aggregate='add')
        zp = _rho(z * dinv, p).astype(jnp.bfloat16)
        # Contract dim 0 of H with dim 0 of zp: H^T is never materialized.
        # TODO(synk): if the bundle shows this contraction saturating the XLU
        # (vxpose per tile), materialize H^T once on v5e/v6e where VMEM allows.
        xe_raw = jax.lax.dot_general(
            h, zp, dimension_numbers=(((0,), (0,)), ((), ())),
            preferred_element_type=jnp.float32)               # (M, F)
        return _inv_rho(xe_raw * deinv, p)

    def e2v_scaled(xe):
        # (1 - alpha) * E2V(xe): the (1-alpha)/sqrt(D) scale is prefolded.
        xv = jnp.dot(h, xe.astype(jnp.bfloat16),
                     preferred_element_type=jnp.float32)       # (N, F)
        return xv * dinva

    def inv_phi_from_xe(xe):
        # phi(Z) = 2*sqrt(sum_e ||V2E(Z)_e||^2)  =>  1/phi = 0.5*rsqrt(sum)
        # (rsqrt goes to the EUP slot; tiny clamp guards an all-zero input.)
        s = jnp.sum(xe * xe, keepdims=True)                    # (1, 1)
        return 0.5 * jax.lax.rsqrt(jnp.maximum(s, 1e-30))

    # --- init: U = X / phi(X); reuse V2E(X) via homogeneity V2E(X/c)=V2E(X)/c
    xe_x = v2e(x)
    inv_phi_x = inv_phi_from_xe(xe_x)
    u = x * inv_phi_x
    alpha_u = alpha * u                   # hoisted out of the loop
    f0 = u
    xe_f0 = xe_x * inv_phi_x

    tol2 = jnp.float32(tol) * jnp.float32(tol)

    def body(_, carry):
        f, xe_f, done = carry             # done: (1, 1) f32 early-stop flag
        g = e2v_scaled(xe_f) + alpha_u
        xe_g = v2e(g)
        inv_phi_g = inv_phi_from_xe(xe_g)
        f_new = g * inv_phi_g
        xe_new = xe_g * inv_phi_g         # reuse: V2E(G/phi(G)) == V2E(G)/phi(G)
        # ||F - F_last|| / ||F|| < tol   <=>   ||F - F_last||^2 < tol^2 ||F||^2
        diff = f_new - f
        diff2 = jnp.sum(diff * diff, keepdims=True)
        num2 = jnp.sum(f_new * f_new, keepdims=True)
        frozen = done > 0.0               # once converged, freeze F (== break)
        f_out = jnp.where(frozen, f, f_new)
        xe_out = jnp.where(frozen, xe_f, xe_new)
        done_out = jnp.maximum(done, (diff2 < tol2 * num2).astype(jnp.float32))
        return f_out, xe_out, done_out

    init = (f0, xe_f0, jnp.zeros((1, 1), jnp.float32))
    f, _, _ = jax.lax.fori_loop(0, max_steps, body, init,
                                unroll=(max_steps <= 8))

    # --- classifier epilogue (dropout is identity in eval):
    #     Linear -> ReLU -> LayerNorm -> Linear, on the VMEM-resident F.
    y = jnp.dot(f.astype(jnp.bfloat16), w1_ref[...],
                preferred_element_type=jnp.float32) + b1_ref[...]
    y = jnp.maximum(y, 0.0)                                   # ReLU
    mu = jnp.mean(y, axis=-1, keepdims=True)                  # LayerNorm (f32)
    var = jnp.mean((y - mu) * (y - mu), axis=-1, keepdims=True)
    y = (y - mu) * jax.lax.rsqrt(var + eps) * ln_g_ref[...] + ln_b_ref[...]
    o_ref[...] = jnp.dot(y.astype(jnp.bfloat16), w2_ref[...],
                         preferred_element_type=jnp.float32) + b2_ref[...]


def _vmem_budget_bytes(N, M, F, H, C):
    est = (
        2 * N * M * 2            # H (bf16) + bf16 cast scratch
        + 8 * N * F * 4          # X, U, alpha*U, F, G, diff + temps (f32)
        + 6 * M * F * 4          # Xe buffers + temps (f32)
        + 2 * N * H * 4          # classifier hidden activation + temp
        + N * C * 4              # logits
        + (F * H + H * C) * 2    # bf16 weights
        + (4 * H + 2 * C) * 4    # biases / LayerNorm params
        + 3 * (N + M) * 4        # degree vectors
    )
    return int(min(max(2 * est + (4 << 20), 16 << 20), 100 << 20))


# ---------------------------------------------------------------------------
# HyperND forward = ONE pallas_call (diffusion + classifier fused)
# ---------------------------------------------------------------------------
@functools.partial(jax.jit, static_argnames=("p", "alpha", "tol", "max_steps",
                                              "ln_eps"))
def hypernd_forward(x, h_inc, params, *, p, alpha, tol, max_steps,
                    ln_eps=1e-5):
    # TODO(synk): this single-program kernel assumes dense H and all diffusion
    # state fit in VMEM; very large graphs need the node-tiled streaming path.
    N, M = h_inc.shape
    F = x.shape[1]
    w1, b1, gamma, beta, w2, b2 = params
    H = w1.shape[1]
    C = w2.shape[1]

    d_deg = jnp.sum(h_inc, axis=1, keepdims=True)        # node degrees D  (N,1)
    de_deg = jnp.sum(h_inc, axis=0).reshape(M, 1)         # edge degrees DE (M,1)
    # safe divide: isolated nodes / empty edges contribute 0 instead of inf
    dinv = jnp.where(d_deg > 0, jax.lax.rsqrt(jnp.maximum(d_deg, 1e-30)), 0.0)
    deinv = jnp.where(de_deg > 0, 1.0 / jnp.maximum(de_deg, 1e-30), 0.0)
    dinv_alpha = (1.0 - alpha) * dinv                     # hoisted scale
    h_bf16 = h_inc.astype(jnp.bfloat16)                   # 0/1 exact in bf16
    w1_bf16 = w1.astype(jnp.bfloat16)
    w2_bf16 = w2.astype(jnp.bfloat16)

    vmem = pl.BlockSpec(memory_space=pltpu.MemorySpace.VMEM)
    kernel = functools.partial(_hypernd_kernel, p=p, alpha=alpha, tol=tol,
                               max_steps=max_steps, eps=ln_eps)
    return pl.pallas_call(
        kernel,
        out_shape=jax.ShapeDtypeStruct((N, C), jnp.float32),
        in_specs=[vmem] * 11,
        out_specs=vmem,
        compiler_params=pltpu.CompilerParams(
            vmem_limit_bytes=_vmem_budget_bytes(N, M, F, H, C)),
    )(h_bf16, x, dinv, dinv_alpha, deinv,
      w1_bf16, b1, gamma, beta, w2_bf16, b2)


# ---------------------------------------------------------------------------
if __name__ == "__main__":
    # args: HyperND_ord=2.0, HyperND_tol=1e-6, HyperND_steps=4, aggregate='add',
    #       restart_alpha=0.1, Classifier_hidden=32, Classifier_num_layers=2,
    #       dropout (inactive in eval), normalization='ln'
    p, tol, max_steps, alpha = 2.0, 1e-6, 4, 0.1
    N, M = 64, 16                      # nodes, hyperedges
    num_features, hidden, num_classes = 32, 32, 8

    key = jax.random.PRNGKey(0)
    kx, kw1, kw2 = jax.random.split(key, 3)

    # node features (nonnegative, like bag-of-words)
    x = jax.random.uniform(kx, (N, num_features), dtype=jnp.float32)

    # hypergraph edge_index: V (node ids), E (hyperedge ids); every node in 2 edges
    v_idx = jnp.concatenate([jnp.arange(N), jnp.arange(N)])
    e_idx = jnp.concatenate([jnp.arange(N) % M, (jnp.arange(N) + 5) % M])
    H_inc = jnp.zeros((N, M), jnp.float32).at[v_idx, e_idx].add(1.0)

    # deterministic classifier parameters (Linear/LayerNorm shapes from __init__)
    w1 = jax.random.normal(kw1, (num_features, hidden), jnp.float32) / jnp.sqrt(
        jnp.float32(num_features))
    b1 = jnp.zeros((1, hidden), jnp.float32)
    gamma = jnp.ones((1, hidden), jnp.float32)
    beta = jnp.zeros((1, hidden), jnp.float32)
    w2 = jax.random.normal(kw2, (hidden, num_classes), jnp.float32) / jnp.sqrt(
        jnp.float32(hidden))
    b2 = jnp.zeros((1, num_classes), jnp.float32)
    params = (w1, b1, gamma, beta, w2, b2)

    out = hypernd_forward(x, H_inc, params, p=p, alpha=alpha, tol=tol,
                          max_steps=max_steps)
    out = jax.block_until_ready(out)
    assert out.shape == (N, num_classes)
    assert bool(jnp.all(jnp.isfinite(out)))
    print("KERNEL_OK")
</pallas_src>

<mosaic_0001>
module attributes {stable_mosaic.version = 11 : i64} {
  func.func @_hypernd_kernel(%arg0: memref<64x16xbf16, #tpu.memory_space<vmem>>, %arg1: memref<64x32xf32, #tpu.memory_space<vmem>>, %arg2: memref<64x1xf32, #tpu.memory_space<vmem>>, %arg3: memref<64x1xf32, #tpu.memory_space<vmem>>, %arg4: memref<16x1xf32, #tpu.memory_space<vmem>>, %arg5: memref<32x32xbf16, #tpu.memory_space<vmem>>, %arg6: memref<1x32xf32, #tpu.memory_space<vmem>>, %arg7: memref<1x32xf32, #tpu.memory_space<vmem>>, %arg8: memref<1x32xf32, #tpu.memory_space<vmem>>, %arg9: memref<32x8xbf16, #tpu.memory_space<vmem>>, %arg10: memref<1x8xf32, #tpu.memory_space<vmem>>, %arg11: memref<64x8xf32, #tpu.memory_space<vmem>>) attributes {dimension_semantics = [], scalar_prefetch = 0 : i64, scratch_operands = 0 : i64, tpu.core_type = #tpu.core_type<tc>} {
    %c0 = arith.constant 0 : index
    %c0_0 = arith.constant 0 : index
    %0 = vector.load %arg0[%c0, %c0_0] : memref<64x16xbf16, #tpu.memory_space<vmem>>, vector<64x16xbf16>
    %c0_1 = arith.constant 0 : index
    %c0_2 = arith.constant 0 : index
    %1 = vector.load %arg1[%c0_1, %c0_2] : memref<64x32xf32, #tpu.memory_space<vmem>>, vector<64x32xf32>
    %c0_3 = arith.constant 0 : index
    %c0_4 = arith.constant 0 : index
    %2 = vector.load %arg2[%c0_3, %c0_4] : memref<64x1xf32, #tpu.memory_space<vmem>>, vector<64x1xf32>
    %c0_5 = arith.constant 0 : index
    %c0_6 = arith.constant 0 : index
    %3 = vector.load %arg3[%c0_5, %c0_6] : memref<64x1xf32, #tpu.memory_space<vmem>>, vector<64x1xf32>
    %c0_7 = arith.constant 0 : index
    %c0_8 = arith.constant 0 : index
    %4 = vector.load %arg4[%c0_7, %c0_8] : memref<16x1xf32, #tpu.memory_space<vmem>>, vector<16x1xf32>
    %5 = vector.broadcast %2 : vector<64x1xf32> to vector<64x32xf32>
    %6 = arith.mulf %1, %5 : vector<64x32xf32>
    %7 = arith.mulf %6, %6 : vector<64x32xf32>
    %8 = arith.truncf %7 : vector<64x32xf32> to vector<64x32xbf16>
    %cst = arith.constant dense<0.000000e+00> : vector<16x32xf32>
    %9 = tpu.matmul %0, %8, %cst {dimension_numbers = #tpu.dot_dimension_numbers<[0], [0], [1], [1], [0, 1, 1, 1], [], []>} : vector<64x16xbf16>, vector<64x32xbf16>, vector<16x32xf32> -> vector<16x32xf32>
    %10 = vector.broadcast %4 : vector<16x1xf32> to vector<16x32xf32>
    %11 = arith.mulf %9, %10 : vector<16x32xf32>
    %12 = math.sqrt %11 : vector<16x32xf32>
    %13 = arith.mulf %12, %12 : vector<16x32xf32>
    %14 = vector.shape_cast %13 : vector<16x32xf32> to vector<1x16x32xf32>
    %cst_9 = arith.constant dense<0.000000e+00> : vector<1xf32>
    %15 = vector.multi_reduction <add>, %14, %cst_9 [1, 2] : vector<1x16x32xf32> to vector<1xf32>
    %16 = vector.shape_cast %15 : vector<1xf32> to vector<1x1x1xf32>
    %17 = vector.extract %16[0, 0, 0] : f32 from vector<1x1x1xf32>
    %18 = vector.broadcast %17 : f32 to vector<1x1xf32>
    %cst_10 = arith.constant 1.000000e-30 : f32
    %19 = vector.broadcast %cst_10 : f32 to vector<1x1xf32>
    %20 = arith.maximumf %18, %19 : vector<1x1xf32>
    %21 = math.rsqrt %20 : vector<1x1xf32>
    %cst_11 = arith.constant 5.000000e-01 : f32
    %22 = vector.broadcast %cst_11 : f32 to vector<1x1xf32>
    %23 = arith.mulf %22, %21 : vector<1x1xf32>
    %24 = vector.broadcast %23 : vector<1x1xf32> to vector<64x32xf32>
    %25 = arith.mulf %1, %24 : vector<64x32xf32>
    %cst_12 = arith.constant 1.000000e-01 : f32
    %26 = vector.broadcast %cst_12 : f32 to vector<64x32xf32>
    %27 = arith.mulf %26, %25 : vector<64x32xf32>
    %28 = vector.broadcast %23 : vector<1x1xf32> to vector<16x32xf32>
    %29 = arith.mulf %12, %28 : vector<16x32xf32>
    %cst_13 = arith.constant 9.99999997E-7 : f32
    %cst_14 = arith.constant 9.99999997E-7 : f32
    %30 = arith.mulf %cst_13, %cst_14 : f32
    %cst_15 = arith.constant 0.000000e+00 : f32
    %31 = vector.broadcast %cst_15 : f32 to vector<1x1xf32>
    %c0_i32 = arith.constant 0 : i32
    %32 = arith.truncf %29 : vector<16x32xf32> to vector<16x32xbf16>
    %cst_16 = arith.constant dense<0.000000e+00> : vector<64x32xf32>
    %33 = tpu.matmul %0, %32, %cst_16 {dimension_numbers = #tpu.dot_dimension_numbers<[1], [0], [0], [1], [0, 0, 1, 1], [], []>} : vector<64x16xbf16>, vector<16x32xbf16>, vector<64x32xf32> -> vector<64x32xf32>
    %34 = vector.broadcast %3 : vector<64x1xf32> to vector<64x32xf32>
    %35 = arith.mulf %33, %34 : vector<64x32xf32>
    %36 = arith.addf %35, %27 : vector<64x32xf32>
    %37 = vector.broadcast %2 : vector<64x1xf32> to vector<64x32xf32>
    %38 = arith.mulf %36, %37 : vector<64x32xf32>
    %39 = arith.mulf %38, %38 : vector<64x32xf32>
    %40 = arith.truncf %39 : vector<64x32xf32> to vector<64x32xbf16>
    %cst_17 = arith.constant dense<0.000000e+00> : vector<16x32xf32>
    %41 = tpu.matmul %0, %40, %cst_17 {dimension_numbers = #tpu.dot_dimension_numbers<[0], [0], [1], [1], [0, 1, 1, 1], [], []>} : vector<64x16xbf16>, vector<64x32xbf16>, vector<16x32xf32> -> vector<16x32xf32>
    %42 = vector.broadcast %4 : vector<16x1xf32> to vector<16x32xf32>
    %43 = arith.mulf %41, %42 : vector<16x32xf32>
    %44 = math.sqrt %43 : vector<16x32xf32>
    %45 = arith.mulf %44, %44 : vector<16x32xf32>
    %46 = vector.shape_cast %45 : vector<16x32xf32> to vector<1x16x32xf32>
    %cst_18 = arith.constant dense<0.000000e+00> : vector<1xf32>
    %47 = vector.multi_reduction <add>, %46, %cst_18 [1, 2] : vector<1x16x32xf32> to vector<1xf32>
    %48 = vector.shape_cast %47 : vector<1xf32> to vector<1x1x1xf32>
    %49 = vector.extract %48[0, 0, 0] : f32 from vector<1x1x1xf32>
    %50 = vector.broadcast %49 : f32 to vector<1x1xf32>
    %cst_19 = arith.constant 1.000000e-30 : f32
    %51 = vector.broadcast %cst_19 : f32 to vector<1x1xf32>
    %52 = arith.maximumf %50, %51 : vector<1x1xf32>
    %53 = math.rsqrt %52 : vector<1x1xf32>
    %cst_20 = arith.constant 5.000000e-01 : f32
    %54 = vector.broadcast %cst_20 : f32 to vector<1x1xf32>
    %55 = arith.mulf %54, %53 : vector<1x1xf32>
    %56 = vector.broadcast %55 : vector<1x1xf32> to vector<64x32xf32>
    %57 = arith.mulf %36, %56 : vector<64x32xf32>
    %58 = vector.broadcast %55 : vector<1x1xf32> to vector<16x32xf32>
    %59 = arith.mulf %44, %58 : vector<16x32xf32>
    %60 = arith.subf %57, %25 : vector<64x32xf32>
    %61 = arith.mulf %60, %60 : vector<64x32xf32>
    %62 = vector.shape_cast %61 : vector<64x32xf32> to vector<1x64x32xf32>
    %cst_21 = arith.constant dense<0.000000e+00> : vector<1xf32>
    %63 = vector.multi_reduction <add>, %62, %cst_21 [1, 2] : vector<1x64x32xf32> to vector<1xf32>
    %64 = vector.shape_cast %63 : vector<1xf32> to vector<1x1x1xf32>
    %65 = vector.extract %64[0, 0, 0] : f32 from vector<1x1x1xf32>
    %66 = vector.broadcast %65 : f32 to vector<1x1xf32>
    %67 = arith.mulf %57, %57 : vector<64x32xf32>
    %68 = vector.shape_cast %67 : vector<64x32xf32> to vector<1x64x32xf32>
    %cst_22 = arith.constant dense<0.000000e+00> : vector<1xf32>
    %69 = vector.multi_reduction <add>, %68, %cst_22 [1, 2] : vector<1x64x32xf32> to vector<1xf32>
    %70 = vector.shape_cast %69 : vector<1xf32> to vector<1x1x1xf32>
    %71 = vector.extract %70[0, 0, 0] : f32 from vector<1x1x1xf32>
    %72 = vector.broadcast %71 : f32 to vector<1x1xf32>
    %cst_23 = arith.constant 0.000000e+00 : f32
    %73 = vector.broadcast %cst_23 : f32 to vector<1x1xf32>
    %74 = arith.cmpf ogt, %31, %73 : vector<1x1xf32>
    %75 = vector.shape_cast %74 : vector<1x1xi1> to vector<1x1xi1>
    %76 = vector.broadcast %75 : vector<1x1xi1> to vector<64x32xi1>
    %77 = arith.select %76, %25, %57 : vector<64x32xi1>, vector<64x32xf32>
    %78 = vector.shape_cast %74 : vector<1x1xi1> to vector<1x1xi1>
    %79 = vector.broadcast %78 : vector<1x1xi1> to vector<16x32xi1>
    %80 = arith.select %79, %29, %59 : vector<16x32xi1>, vector<16x32xf32>
    %81 = vector.broadcast %30 : f32 to vector<1x1xf32>
    %82 = arith.mulf %81, %72 : vector<1x1xf32>
    %83 = arith.cmpf olt, %66, %82 : vector<1x1xf32>
    %84 = arith.extui %83 : vector<1x1xi1> to vector<1x1xi32>
    %85 = arith.sitofp %84 : vector<1x1xi32> to vector<1x1xf32>
    %86 = arith.maximumf %31, %85 : vector<1x1xf32>
    %c1_i32 = arith.constant 1 : i32
    %87 = arith.truncf %80 : vector<16x32xf32> to vector<16x32xbf16>
    %cst_24 = arith.constant dense<0.000000e+00> : vector<64x32xf32>
    %88 = tpu.matmul %0, %87, %cst_24 {dimension_numbers = #tpu.dot_dimension_numbers<[1], [0], [0], [1], [0, 0, 1, 1], [], []>} : vector<64x16xbf16>, vector<16x32xbf16>, vector<64x32xf32> -> vector<64x32xf32>
    %89 = vector.broadcast %3 : vector<64x1xf32> to vector<64x32xf32>
    %90 = arith.mulf %88, %89 : vector<64x32xf32>
    %91 = arith.addf %90, %27 : vector<64x32xf32>
    %92 = vector.broadcast %2 : vector<64x1xf32> to vector<64x32xf32>
    %93 = arith.mulf %91, %92 : vector<64x32xf32>
    %94 = arith.mulf %93, %93 : vector<64x32xf32>
    %95 = arith.truncf %94 : vector<64x32xf32> to vector<64x32xbf16>
    %cst_25 = arith.constant dense<0.000000e+00> : vector<16x32xf32>
    %96 = tpu.matmul %0, %95, %cst_25 {dimension_numbers = #tpu.dot_dimension_numbers<[0], [0], [1], [1], [0, 1, 1, 1], [], []>} : vector<64x16xbf16>, vector<64x32xbf16>, vector<16x32xf32> -> vector<16x32xf32>
    %97 = vector.broadcast %4 : vector<16x1xf32> to vector<16x32xf32>
    %98 = arith.mulf %96, %97 : vector<16x32xf32>
    %99 = math.sqrt %98 : vector<16x32xf32>
    %100 = arith.mulf %99, %99 : vector<16x32xf32>
    %101 = vector.shape_cast %100 : vector<16x32xf32> to vector<1x16x32xf32>
    %cst_26 = arith.constant dense<0.000000e+00> : vector<1xf32>
    %102 = vector.multi_reduction <add>, %101, %cst_26 [1, 2] : vector<1x16x32xf32> to vector<1xf32>
    %103 = vector.shape_cast %102 : vector<1xf32> to vector<1x1x1xf32>
    %104 = vector.extract %103[0, 0, 0] : f32 from vector<1x1x1xf32>
    %105 = vector.broadcast %104 : f32 to vector<1x1xf32>
    %cst_27 = arith.constant 1.000000e-30 : f32
    %106 = vector.broadcast %cst_27 : f32 to vector<1x1xf32>
    %107 = arith.maximumf %105, %106 : vector<1x1xf32>
    %108 = math.rsqrt %107 : vector<1x1xf32>
    %cst_28 = arith.constant 5.000000e-01 : f32
    %109 = vector.broadcast %cst_28 : f32 to vector<1x1xf32>
    %110 = arith.mulf %109, %108 : vector<1x1xf32>
    %111 = vector.broadcast %110 : vector<1x1xf32> to vector<64x32xf32>
    %112 = arith.mulf %91, %111 : vector<64x32xf32>
    %113 = vector.broadcast %110 : vector<1x1xf32> to vector<16x32xf32>
    %114 = arith.mulf %99, %113 : vector<16x32xf32>
    %115 = arith.subf %112, %77 : vector<64x32xf32>
    %116 = arith.mulf %115, %115 : vector<64x32xf32>
    %117 = vector.shape_cast %116 : vector<64x32xf32> to vector<1x64x32xf32>
    %cst_29 = arith.constant dense<0.000000e+00> : vector<1xf32>
    %118 = vector.multi_reduction <add>, %117, %cst_29 [1, 2] : vector<1x64x32xf32> to vector<1xf32>
    %119 = vector.shape_cast %118 : vector<1xf32> to vector<1x1x1xf32>
    %120 = vector.extract %119[0, 0, 0] : f32 from vector<1x1x1xf32>
    %121 = vector.broadcast %120 : f32 to vector<1x1xf32>
    %122 = arith.mulf %112, %112 : vector<64x32xf32>
    %123 = vector.shape_cast %122 : vector<64x32xf32> to vector<1x64x32xf32>
    %cst_30 = arith.constant dense<0.000000e+00> : vector<1xf32>
    %124 = vector.multi_reduction <add>, %123, %cst_30 [1, 2] : vector<1x64x32xf32> to vector<1xf32>
    %125 = vector.shape_cast %124 : vector<1xf32> to vector<1x1x1xf32>
    %126 = vector.extract %125[0, 0, 0] : f32 from vector<1x1x1xf32>
    %127 = vector.broadcast %126 : f32 to vector<1x1xf32>
    %cst_31 = arith.constant 0.000000e+00 : f32
    %128 = vector.broadcast %cst_31 : f32 to vector<1x1xf32>
    %129 = arith.cmpf ogt, %86, %128 : vector<1x1xf32>
    %130 = vector.shape_cast %129 : vector<1x1xi1> to vector<1x1xi1>
    %131 = vector.broadcast %130 : vector<1x1xi1> to vector<64x32xi1>
    %132 = arith.select %131, %77, %112 : vector<64x32xi1>, vector<64x32xf32>
    %133 = vector.shape_cast %129 : vector<1x1xi1> to vector<1x1xi1>
    %134 = vector.broadcast %133 : vector<1x1xi1> to vector<16x32xi1>
    %135 = arith.select %134, %80, %114 : vector<16x32xi1>, vector<16x32xf32>
    %136 = vector.broadcast %30 : f32 to vector<1x1xf32>
    %137 = arith.mulf %136, %127 : vector<1x1xf32>
    %138 = arith.cmpf olt, %121, %137 : vector<1x1xf32>
    %139 = arith.extui %138 : vector<1x1xi1> to vector<1x1xi32>
    %140 = arith.sitofp %139 : vector<1x1xi32> to vector<1x1xf32>
    %141 = arith.maximumf %86, %140 : vector<1x1xf32>
    %c2_i32 = arith.constant 2 : i32
    %142 = arith.truncf %135 : vector<16x32xf32> to vector<16x32xbf16>
    %cst_32 = arith.constant dense<0.000000e+00> : vector<64x32xf32>
    %143 = tpu.matmul %0, %142, %cst_32 {dimension_numbers = #tpu.dot_dimension_numbers<[1], [0], [0], [1], [0, 0, 1, 1], [], []>} : vector<64x16xbf16>, vector<16x32xbf16>, vector<64x32xf32> -> vector<64x32xf32>
    %144 = vector.broadcast %3 : vector<64x1xf32> to vector<64x32xf32>
    %145 = arith.mulf %143, %144 : vector<64x32xf32>
    %146 = arith.addf %145, %27 : vector<64x32xf32>
    %147 = vector.broadcast %2 : vector<64x1xf32> to vector<64x32xf32>
    %148 = arith.mulf %146, %147 : vector<64x32xf32>
    %149 = arith.mulf %148, %148 : vector<64x32xf32>
    %150 = arith.truncf %149 : vector<64x32xf32> to vector<64x32xbf16>
    %cst_33 = arith.constant dense<0.000000e+00> : vector<16x32xf32>
    %151 = tpu.matmul %0, %150, %cst_33 {dimension_numbers = #tpu.dot_dimension_numbers<[0], [0], [1], [1], [0, 1, 1, 1], [], []>} : vector<64x16xbf16>, vector<64x32xbf16>, vector<16x32xf32> -> vector<16x32xf32>
    %152 = vector.broadcast %4 : vector<16x1xf32> to vector<16x32xf32>
    %153 = arith.mulf %151, %152 : vector<16x32xf32>
    %154 = math.sqrt %153 : vector<16x32xf32>
    %155 = arith.mulf %154, %154 : vector<16x32xf32>
    %156 = vector.shape_cast %155 : vector<16x32xf32> to vector<1x16x32xf32>
    %cst_34 = arith.constant dense<0.000000e+00> : vector<1xf32>
    %157 = vector.multi_reduction <add>, %156, %cst_34 [1, 2] : vector<1x16x32xf32> to vector<1xf32>
    %158 = vector.shape_cast %157 : vector<1xf32> to vector<1x1x1xf32>
    %159 = vector.extract %158[0, 0, 0] : f32 from vector<1x1x1xf32>
    %160 = vector.broadcast %159 : f32 to vector<1x1xf32>
    %cst_35 = arith.constant 1.000000e-30 : f32
    %161 = vector.broadcast %cst_35 : f32 to vector<1x1xf32>
    %162 = arith.maximumf %160, %161 : vector<1x1xf32>
    %163 = math.rsqrt %162 : vector<1x1xf32>
    %cst_36 = arith.constant 5.000000e-01 : f32
    %164 = vector.broadcast %cst_36 : f32 to vector<1x1xf32>
    %165 = arith.mulf %164, %163 : vector<1x1xf32>
    %166 = vector.broadcast %165 : vector<1x1xf32> to vector<64x32xf32>
    %167 = arith.mulf %146, %166 : vector<64x32xf32>
    %168 = vector.broadcast %165 : vector<1x1xf32> to vector<16x32xf32>
    %169 = arith.mulf %154, %168 : vector<16x32xf32>
    %170 = arith.subf %167, %132 : vector<64x32xf32>
    %171 = arith.mulf %170, %170 : vector<64x32xf32>
    %172 = vector.shape_cast %171 : vector<64x32xf32> to vector<1x64x32xf32>
    %cst_37 = arith.constant dense<0.000000e+00> : vector<1xf32>
    %173 = vector.multi_reduction <add>, %172, %cst_37 [1, 2] : vector<1x64x32xf32> to vector<1xf32>
    %174 = vector.shape_cast %173 : vector<1xf32> to vector<1x1x1xf32>
    %175 = vector.extract %174[0, 0, 0] : f32 from vector<1x1x1xf32>
    %176 = vector.broadcast %175 : f32 to vector<1x1xf32>
    %177 = arith.mulf %167, %167 : vector<64x32xf32>
    %178 = vector.shape_cast %177 : vector<64x32xf32> to vector<1x64x32xf32>
    %cst_38 = arith.constant dense<0.000000e+00> : vector<1xf32>
    %179 = vector.multi_reduction <add>, %178, %cst_38 [1, 2] : vector<1x64x32xf32> to vector<1xf32>
    %180 = vector.shape_cast %179 : vector<1xf32> to vector<1x1x1xf32>
    %181 = vector.extract %180[0, 0, 0] : f32 from vector<1x1x1xf32>
    %182 = vector.broadcast %181 : f32 to vector<1x1xf32>
    %cst_39 = arith.constant 0.000000e+00 : f32
    %183 = vector.broadcast %cst_39 : f32 to vector<1x1xf32>
    %184 = arith.cmpf ogt, %141, %183 : vector<1x1xf32>
    %185 = vector.shape_cast %184 : vector<1x1xi1> to vector<1x1xi1>
    %186 = vector.broadcast %185 : vector<1x1xi1> to vector<64x32xi1>
    %187 = arith.select %186, %132, %167 : vector<64x32xi1>, vector<64x32xf32>
    %188 = vector.shape_cast %184 : vector<1x1xi1> to vector<1x1xi1>
    %189 = vector.broadcast %188 : vector<1x1xi1> to vector<16x32xi1>
    %190 = arith.select %189, %135, %169 : vector<16x32xi1>, vector<16x32xf32>
    %191 = vector.broadcast %30 : f32 to vector<1x1xf32>
    %192 = arith.mulf %191, %182 : vector<1x1xf32>
    %193 = arith.cmpf olt, %176, %192 : vector<1x1xf32>
    %194 = arith.extui %193 : vector<1x1xi1> to vector<1x1xi32>
    %195 = arith.sitofp %194 : vector<1x1xi32> to vector<1x1xf32>
    %196 = arith.maximumf %141, %195 : vector<1x1xf32>
    %c3_i32 = arith.constant 3 : i32
    %197 = arith.truncf %190 : vector<16x32xf32> to vector<16x32xbf16>
    %cst_40 = arith.constant dense<0.000000e+00> : vector<64x32xf32>
    %198 = tpu.matmul %0, %197, %cst_40 {dimension_numbers = #tpu.dot_dimension_numbers<[1], [0], [0], [1], [0, 0, 1, 1], [], []>} : vector<64x16xbf16>, vector<16x32xbf16>, vector<64x32xf32> -> vector<64x32xf32>
    %199 = vector.broadcast %3 : vector<64x1xf32> to vector<64x32xf32>
    %200 = arith.mulf %198, %199 : vector<64x32xf32>
    %201 = arith.addf %200, %27 : vector<64x32xf32>
    %202 = vector.broadcast %2 : vector<64x1xf32> to vector<64x32xf32>
    %203 = arith.mulf %201, %202 : vector<64x32xf32>
    %204 = arith.mulf %203, %203 : vector<64x32xf32>
    %205 = arith.truncf %204 : vector<64x32xf32> to vector<64x32xbf16>
    %cst_41 = arith.constant dense<0.000000e+00> : vector<16x32xf32>
    %206 = tpu.matmul %0, %205, %cst_41 {dimension_numbers = #tpu.dot_dimension_numbers<[0], [0], [1], [1], [0, 1, 1, 1], [], []>} : vector<64x16xbf16>, vector<64x32xbf16>, vector<16x32xf32> -> vector<16x32xf32>
    %207 = vector.broadcast %4 : vector<16x1xf32> to vector<16x32xf32>
    %208 = arith.mulf %206, %207 : vector<16x32xf32>
    %209 = math.sqrt %208 : vector<16x32xf32>
    %210 = arith.mulf %209, %209 : vector<16x32xf32>
    %211 = vector.shape_cast %210 : vector<16x32xf32> to vector<1x16x32xf32>
    %cst_42 = arith.constant dense<0.000000e+00> : vector<1xf32>
    %212 = vector.multi_reduction <add>, %211, %cst_42 [1, 2] : vector<1x16x32xf32> to vector<1xf32>
    %213 = vector.shape_cast %212 : vector<1xf32> to vector<1x1x1xf32>
    %214 = vector.extract %213[0, 0, 0] : f32 from vector<1x1x1xf32>
    %215 = vector.broadcast %214 : f32 to vector<1x1xf32>
    %cst_43 = arith.constant 1.000000e-30 : f32
    %216 = vector.broadcast %cst_43 : f32 to vector<1x1xf32>
    %217 = arith.maximumf %215, %216 : vector<1x1xf32>
    %218 = math.rsqrt %217 : vector<1x1xf32>
    %cst_44 = arith.constant 5.000000e-01 : f32
    %219 = vector.broadcast %cst_44 : f32 to vector<1x1xf32>
    %220 = arith.mulf %219, %218 : vector<1x1xf32>
    %221 = vector.broadcast %220 : vector<1x1xf32> to vector<64x32xf32>
    %222 = arith.mulf %201, %221 : vector<64x32xf32>
    %223 = vector.broadcast %220 : vector<1x1xf32> to vector<16x32xf32>
    %224 = arith.mulf %209, %223 : vector<16x32xf32>
    %225 = arith.subf %222, %187 : vector<64x32xf32>
    %226 = arith.mulf %225, %225 : vector<64x32xf32>
    %227 = vector.shape_cast %226 : vector<64x32xf32> to vector<1x64x32xf32>
    %cst_45 = arith.constant dense<0.000000e+00> : vector<1xf32>
    %228 = vector.multi_reduction <add>, %227, %cst_45 [1, 2] : vector<1x64x32xf32> to vector<1xf32>
    %229 = vector.shape_cast %228 : vector<1xf32> to vector<1x1x1xf32>
    %230 = vector.extract %229[0, 0, 0] : f32 from vector<1x1x1xf32>
    %231 = vector.broadcast %230 : f32 to vector<1x1xf32>
    %232 = arith.mulf %222, %222 : vector<64x32xf32>
    %233 = vector.shape_cast %232 : vector<64x32xf32> to vector<1x64x32xf32>
    %cst_46 = arith.constant dense<0.000000e+00> : vector<1xf32>
    %234 = vector.multi_reduction <add>, %233, %cst_46 [1, 2] : vector<1x64x32xf32> to vector<1xf32>
    %235 = vector.shape_cast %234 : vector<1xf32> to vector<1x1x1xf32>
    %236 = vector.extract %235[0, 0, 0] : f32 from vector<1x1x1xf32>
    %237 = vector.broadcast %236 : f32 to vector<1x1xf32>
    %cst_47 = arith.constant 0.000000e+00 : f32
    %238 = vector.broadcast %cst_47 : f32 to vector<1x1xf32>
    %239 = arith.cmpf ogt, %196, %238 : vector<1x1xf32>
    %240 = vector.shape_cast %239 : vector<1x1xi1> to vector<1x1xi1>
    %241 = vector.broadcast %240 : vector<1x1xi1> to vector<64x32xi1>
    %242 = arith.select %241, %187, %222 : vector<64x32xi1>, vector<64x32xf32>
    %243 = vector.shape_cast %239 : vector<1x1xi1> to vector<1x1xi1>
    %244 = vector.broadcast %243 : vector<1x1xi1> to vector<16x32xi1>
    %245 = arith.select %244, %190, %224 : vector<16x32xi1>, vector<16x32xf32>
    %246 = vector.broadcast %30 : f32 to vector<1x1xf32>
    %247 = arith.mulf %246, %237 : vector<1x1xf32>
    %248 = arith.cmpf olt, %231, %247 : vector<1x1xf32>
    %249 = arith.extui %248 : vector<1x1xi1> to vector<1x1xi32>
    %250 = arith.sitofp %249 : vector<1x1xi32> to vector<1x1xf32>
    %251 = arith.maximumf %196, %250 : vector<1x1xf32>
    %252 = arith.truncf %242 : vector<64x32xf32> to vector<64x32xbf16>
    %c0_48 = arith.constant 0 : index
    %c0_49 = arith.constant 0 : index
    %253 = vector.load %arg5[%c0_48, %c0_49] : memref<32x32xbf16, #tpu.memory_space<vmem>>, vector<32x32xbf16>
    %cst_50 = arith.constant dense<0.000000e+00> : vector<64x32xf32>
    %254 = tpu.matmul %252, %253, %cst_50 {dimension_numbers = #tpu.dot_dimension_numbers<[1], [0], [0], [1], [0, 0, 1, 1], [], []>} : vector<64x32xbf16>, vector<32x32xbf16>, vector<64x32xf32> -> vector<64x32xf32>
    %c0_51 = arith.constant 0 : index
    %c0_52 = arith.constant 0 : index
    %255 = vector.load %arg6[%c0_51, %c0_52] : memref<1x32xf32, #tpu.memory_space<vmem>>, vector<1x32xf32>
    %256 = vector.broadcast %255 : vector<1x32xf32> to vector<64x32xf32>
    %257 = arith.addf %254, %256 : vector<64x32xf32>
    %cst_53 = arith.constant 0.000000e+00 : f32
    %258 = vector.broadcast %cst_53 : f32 to vector<64x32xf32>
    %259 = arith.maximumf %257, %258 : vector<64x32xf32>
    %cst_54 = arith.constant dense<0.000000e+00> : vector<64xf32>
    %260 = vector.multi_reduction <add>, %259, %cst_54 [1] : vector<64x32xf32> to vector<64xf32>
    %261 = vector.shape_cast %260 : vector<64xf32> to vector<64x1xf32>
    %cst_55 = arith.constant 3.200000e+01 : f32
    %262 = vector.broadcast %cst_55 : f32 to vector<64x1xf32>
    %263 = arith.divf %261, %262 : vector<64x1xf32>
    %264 = vector.broadcast %263 : vector<64x1xf32> to vector<64x32xf32>
    %265 = arith.subf %259, %264 : vector<64x32xf32>
    %266 = vector.broadcast %263 : vector<64x1xf32> to vector<64x32xf32>
    %267 = arith.subf %259, %266 : vector<64x32xf32>
    %268 = arith.mulf %265, %267 : vector<64x32xf32>
    %cst_56 = arith.constant dense<0.000000e+00> : vector<64xf32>
    %269 = vector.multi_reduction <add>, %268, %cst_56 [1] : vector<64x32xf32> to vector<64xf32>
    %270 = vector.shape_cast %269 : vector<64xf32> to vector<64x1xf32>
    %cst_57 = arith.constant 3.200000e+01 : f32
    %271 = vector.broadcast %cst_57 : f32 to vector<64x1xf32>
    %272 = arith.divf %270, %271 : vector<64x1xf32>
    %273 = vector.broadcast %263 : vector<64x1xf32> to vector<64x32xf32>
    %274 = arith.subf %259, %273 : vector<64x32xf32>
    %cst_58 = arith.constant 9.99999974E-6 : f32
    %275 = vector.broadcast %cst_58 : f32 to vector<64x1xf32>
    %276 = arith.addf %272, %275 : vector<64x1xf32>
    %277 = math.rsqrt %276 : vector<64x1xf32>
    %278 = vector.broadcast %277 : vector<64x1xf32> to vector<64x32xf32>
    %279 = arith.mulf %274, %278 : vector<64x32xf32>
    %c0_59 = arith.constant 0 : index
    %c0_60 = arith.constant 0 : index
    %280 = vector.load %arg7[%c0_59, %c0_60] : memref<1x32xf32, #tpu.memory_space<vmem>>, vector<1x32xf32>
    %281 = vector.broadcast %280 : vector<1x32xf32> to vector<64x32xf32>
    %282 = arith.mulf %279, %281 : vector<64x32xf32>
    %c0_61 = arith.constant 0 : index
    %c0_62 = arith.constant 0 : index
    %283 = vector.load %arg8[%c0_61, %c0_62] : memref<1x32xf32, #tpu.memory_space<vmem>>, vector<1x32xf32>
    %284 = vector.broadcast %283 : vector<1x32xf32> to vector<64x32xf32>
    %285 = arith.addf %282, %284 : vector<64x32xf32>
    %286 = arith.truncf %285 : vector<64x32xf32> to vector<64x32xbf16>
    %c0_63 = arith.constant 0 : index
    %c0_64 = arith.constant 0 : index
    %287 = vector.load %arg9[%c0_63, %c0_64] : memref<32x8xbf16, #tpu.memory_space<vmem>>, vector<32x8xbf16>
    %cst_65 = arith.constant dense<0.000000e+00> : vector<64x8xf32>
    %288 = tpu.matmul %286, %287, %cst_65 {dimension_numbers = #tpu.dot_dimension_numbers<[1], [0], [0], [1], [0, 0, 1, 1], [], []>} : vector<64x32xbf16>, vector<32x8xbf16>, vector<64x8xf32> -> vector<64x8xf32>
    %c0_66 = arith.constant 0 : index
    %c0_67 = arith.constant 0 : index
    %289 = vector.load %arg10[%c0_66, %c0_67] : memref<1x8xf32, #tpu.memory_space<vmem>>, vector<1x8xf32>
    %290 = vector.broadcast %289 : vector<1x8xf32> to vector<64x8xf32>
    %291 = arith.addf %288, %290 : vector<64x8xf32>
    %c0_68 = arith.constant 0 : index
    %c0_69 = arith.constant 0 : index
    %292 = vector.load %arg11[%c0_68, %c0_69] : memref<64x8xf32, #tpu.memory_space<vmem>>, vector<64x8xf32>
    tpu.vector_store %arg11[%c0_68, %c0_69], %291 {strides = array<i32>} : memref<64x8xf32, #tpu.memory_space<vmem>>, vector<64x8xf32>,
    return
  }
}

</mosaic_0001>

<bundles_post_ra>
// kernel: hypernd_forward.1
= control target key start
LH: loop header
LB: loop body
LE: loop exit
PB: predicated region body
PF: predicated region fallthrough
CT: control target
= control target key end

     0   :  { %v1698_v0 = vmov 0   ;;  %vm173_vm0 = vcmask 523264   ;;  %vm229_vm5 = vcmask 261120   ;;  %vm274_vm9 = vcmask 130048   ;;  %s2704_s2 = inlined_call_operand.vmem [shape: f32[64,1], index: 2, kind: input, shape index: {}]   ;;  %s2705_s4 = inlined_call_operand.vmem [shape: f32[16,1], index: 4, kind: input, shape index: {}]   ;;  %s2706_s3 = inlined_call_operand.vmem [shape: f32[64,1], index: 3, kind: input, shape index: {}]   ;;  %s2707_s0 = inlined_call_operand.vmem [shape: bf16[64,16], index: 0, kind: input, shape index: {}]   ;;  %s2708_s1 = inlined_call_operand.vmem [shape: f32[64,32], index: 1, kind: input, shape index: {}]   ;;  %s2709_s6 = inlined_call_operand.vmem [shape: f32[1,32], index: 6, kind: input, shape index: {}]   ;;  %s2710_s5 = inlined_call_operand.vmem [shape: bf16[32,32], index: 5, kind: input, shape index: {}]   ;;  %s2711_s7 = inlined_call_operand.vmem [shape: f32[1,32], index: 7, kind: input, shape index: {}]   ;;  %s2712_s8 = inlined_call_operand.vmem [shape: f32[1,32], index: 8, kind: input, shape index: {}]   ;;  %s2713_s9 = inlined_call_operand.vmem [shape: bf16[32,8], index: 9, kind: input, shape index: {}]   ;;  %s2714_s10 = inlined_call_operand.vmem [shape: f32[1,8], index: 10, kind: input, shape index: {}]   ;;  %s2715_s11 = inlined_call_operand.vmem [shape: f32[64,8], index: 11, kind: output, shape index: {}]  }
   0x1   :  { %1641 = vset.pattern.permute.xlu2 %v1698_v0  ;;  %1640 = vset.pattern.permute.xlu1 %v1698_v0  ;;  %v61_v1 = vld [vmem:[%s2704_s2 + $0x30] sm:$0xff]  ;;  %v59_v2 = vld [vmem:[%s2704_s2 + $0x20] sm:$0xff]  ;;  %v60_v4 = vld [vmem:[%s2704_s2 + $0x28] sm:$0xff] }
   0x2   :  { %v57_v3 = vld [vmem:[%s2704_s2 + $0x10] sm:$0xff]  ;;  %1639 = vset.pattern.permute.xlu0 %v1698_v0  ;;  %95 = vperm.xlu1 %1640, %v59_v2   ;;  %v62_v5 = vld [vmem:[%s2704_s2 + $0x38] sm:$0xff]  ;;  %v56_v7 = vld [vmem:[%s2704_s2 + $0x8] sm:$0xff] }
   0x3   :  { %105 = vperm.xlu0 %1639, %v61_v1   ;;  %85 = vperm.xlu2 %1641, %v57_v3   ;;  %v58_v6 = vld [vmem:[%s2704_s2 + $0x18] sm:$0xff]  ;;  %v72_v8 = vld [vmem:[%s2705_s4 + $0x8] sm:$0xff]  ;;  %v55_v9 = vld [vmem:[%s2704_s2] sm:$0xff] }
   0x4   :  { %v69_v10 = vld [vmem:[%s2706_s3 + $0x30] sm:$0xff]  ;;  %v71_v11 = vld [vmem:[%s2705_s4] sm:$0xff]  ;;  %v70_v12 = vld [vmem:[%s2706_s3 + $0x38] sm:$0xff] }
   0x5   :  { %v1800_v13 = vld [vmem:[%s2707_s0] sm:$0xff]  ;;  %v68_v15 = vld [vmem:[%s2706_s3 + $0x28] sm:$0xff]  ;;  %v65_v17 = vld [vmem:[%s2706_s3 + $0x10] sm:$0xff] }
   0x6   :  { %v67_v14 = vld [vmem:[%s2706_s3 + $0x20] sm:$0xff]  ;;  %v1812_v16 = vld [vmem:[%s2707_s0 + $0x8] sm:$0xff]  ;;  %v66_v18 = vld [vmem:[%s2706_s3 + $0x18] sm:$0xff] }
   0x7   :  { %v1824_v19 = vld [vmem:[%s2707_s0 + $0x10] sm:$0xff]  ;;  %v64_v20 = vld [vmem:[%s2706_s3 + $0x8] sm:$0xff]  ;;  %v1833_v21 = vld [vmem:[%s2707_s0 + $0x18] sm:$0xff] }
   0x8   :  { %v1845_v25 = vld [vmem:[%s2708_s1 + $0x30] sm:$0xff]  ;;  %v1850_v26 = vld [vmem:[%s2708_s1 + $0x20] sm:$0xff]  ;;  %v1857_v28 = vld [vmem:[%s2708_s1 + $0x28] sm:$0xff] }
   0x9   :  { %v1862_v29 = vld [vmem:[%s2708_s1 + $0x38] sm:$0xff]  ;;  %v1884_v41 = vld [vmem:[%s2708_s1 + $0x10] sm:$0xff]  ;;  %v1897_v51 = vld [vmem:[%s2708_s1] sm:$0xff] }
   0xa   :  { %100 = vperm.xlu1 %1640, %v60_v4   ;;  %v1879_v37 = vld [vmem:[%s2708_s1 + $0x18] sm:$0xff]  ;;  %v1902_v52 = vld [vmem:[%s2708_s1 + $0x8] sm:$0xff] }
   0xb   :  { %110 = vperm.xlu0 %1639, %v62_v5   ;;  %90 = vperm.xlu2 %1641, %v58_v6  }
  0x12   :  { %80 = vperm.xlu1 %1640, %v56_v7  }
  0x13   :  { %75 = vperm.xlu0 %1639, %v55_v9  }
  0x1a   :  { %198 = vperm.xlu1 %1640, %v72_v8  }
  0x1b   :  { %193 = vperm.xlu0 %1639, %v71_v11  }
  0x22   :  { %348 = vperm.xlu1 %1640, %v69_v10  }
  0x2a   :  { %353 = vperm.xlu1 %1640, %v70_v12  }
  0x31   :  { %157 = vxpose.xlu2.c.b16.start [1/4] (short) (narrow) %v1800_v13, 16 }
  0x32   :  { %338 = vperm.xlu1 %1640, %v67_v14  }
  0x3a   :  { %343 = vperm.xlu1 %1640, %v68_v15  }
  0x41   :  { %158 = vxpose.xlu2.c.b16.cont [2/4] (short) (narrow) %v1812_v16, 16 }
  0x42   :  { %328 = vperm.xlu1 %1640, %v65_v17  }
  0x4a   :  { %333 = vperm.xlu1 %1640, %v66_v18  }
  0x51   :  { %159 = vxpose.xlu2.c.b16.cont [3/4] (short) (narrow) %v1824_v19, 16 }
  0x52   :  { %323 = vperm.xlu1 %1640, %v64_v20  }
  0x5d   :  { %v1838_v23 = vpop.permute.xlu2 %85 }
  0x5e   :  { %2733 = vst [vmem:[#allocation2_spill] sm:$0xff] %v1838_v23  ;;  %v115_v45 = vmul.f32 %v1838_v23, %v1884_v41 }
  0x60   :  { %v123_v47 = vmul.f32 %v115_v45, %v115_v45 }
  0x61   :  { %160 = vxpose.xlu2.c.b16.end [4/4] (short) (narrow) %v1833_v21, 16 }
  0x65   :  { %v1874_v36 = vpop.permute.xlu2 %90 }
  0x66   :  { %v116_v43 = vmul.f32 %v1874_v36, %v1879_v37 }
  0x68   :  { %v124_v46 = vmul.f32 %v116_v43, %v116_v43 }
  0x6a   :  { %v130_v48 = vpack.c.bf16 %v124_v46, %v123_v47 }
  0x74   :  { %v1836_v22 = vpop.permute.xlu1 %95 }
  0x75   :  { %v1840_v24 = vpop.permute.xlu0 %105  ;;  %v117_v31 = vmul.f32 %v1836_v22, %v1850_v26 }
  0x76   :  { %v119_v27 = vmul.f32 %v1840_v24, %v1845_v25 }
  0x77   :  { %v125_v39 = vmul.f32 %v117_v31, %v117_v31 }
  0x78   :  { %v127_v35 = vmul.f32 %v119_v27, %v119_v27 }
  0x7c   :  { %v1864_v30 = vpop.permute.xlu1 %100 }
  0x7d   :  { %v1868_v32 = vpop.permute.xlu0 %110  ;;  %v118_v33 = vmul.f32 %v1864_v30, %v1857_v28 }
  0x7e   :  { %v120_v34 = vmul.f32 %v1868_v32, %v1862_v29 }
  0x7f   :  { %v126_v40 = vmul.f32 %v118_v33, %v118_v33 }
  0x80   :  { %v128_v38 = vmul.f32 %v120_v34, %v120_v34 }
  0x81   :  { %v131_v44 = vpack.c.bf16 %v126_v40, %v125_v39 }
  0x82   :  { %v132_v42 = vpack.c.bf16 %v128_v38, %v127_v35 }
  0x84   :  { %181 = vmatpush.bf16.msra.mxu0 %v132_v42  ;;  %v1890_v49 = vpop.permute.xlu1 %80  ;;  %v63_v42 = vld [vmem:[%s2706_s3] sm:$0xff] }
  0x85   :  { %2734 = vst [vmem:[#allocation3_spill] sm:$0xff] %v1890_v49  ;;  %v1892_v50 = vpop.permute.xlu0 %75  ;;  %v114_v54 = vmul.f32 %v1890_v49, %v1902_v52 }
  0x86   :  { %2735 = vst [vmem:[#allocation4_spill] sm:$0xff] %v1892_v50  ;;  %v113_v53 = vmul.f32 %v1892_v50, %v1897_v51 }
  0x87   :  { %v122_v56 = vmul.f32 %v114_v54, %v114_v54 }
  0x88   :  { %182 = vmatpush.bf16.msra.mxu0 %v131_v44  ;;  %v121_v55 = vmul.f32 %v113_v53, %v113_v53 }
  0x8a   :  { %v129_v57 = vpack.c.bf16 %v122_v56, %v121_v55 }
  0x8c   :  { %183 = vmatpush.bf16.msra.mxu0 %v130_v48  ;;  %v1915_v62 = vpop.permute.xlu1 %198 }
  0x8d   :  { %v1912_v59 = vpop.permute.xlu0 %193  ;;  %2738 = vst [vmem:[#allocation7_spill] sm:$0xff] %v1915_v62 }
  0x8e   :  { %2737 = vst [vmem:[#allocation6_spill] sm:$0xff] %v1912_v59 }
  0x90   :  { %184 = vmatpush.bf16.msra.mxu0 %v129_v57 }
  0xd2   :  { %v1908_v58 = vpop.trf.xlu2 }
  0xd3   :  { %2736 = vst [vmem:[#allocation5_spill] sm:$0xff] %v1908_v58  ;;  %1557 = vmatmul.msk.bf16.vlgmr.msra.gmra.mxu0 %vm173_vm0, %v1908_v58 }
 0x150   :  { %v186_v60 = vpop.f32.mrf.mxu0 }
 0x151   :  { %v201_v61 = vmul.f32 %v1912_v59, %v186_v60 }
 0x153   :  { %1646 = vrsqrt.f32 %v201_v61  ;;  %vm210_vm1 = vcmp.eq.f32.partialorder %v201_v61, inf  ;;  %v213_v15 = vand.u32 2147483648, %v201_v61  ;;  %vm212_vm2 = vcmp.eq.f32.partialorder %v201_v61, 0.0 }
 0x158   :  { %v188_v63 = vpop.f32.mrf.mxu0 }
 0x159   :  { %v1647_v0 = vpop.eup %1646  ;;  %v202_v1 = vmul.f32 %v1915_v62, %v188_v63 }
 0x15a   :  { %v204_v2 = vmul.f32 %v1647_v0, %v201_v61 }
 0x15b   :  { %1648 = vrsqrt.f32 %v202_v1  ;;  %vm222_vm3 = vcmp.eq.f32.partialorder %v202_v1, inf  ;;  %v225_v27 = vand.u32 2147483648, %v202_v1  ;;  %vm224_vm4 = vcmp.eq.f32.partialorder %v202_v1, 0.0 }
 0x15c   :  { %v205_v3 = vmul.f32 %v1647_v0, %v204_v2 }
 0x15e   :  { %v206_v4 = vmul.f32 0.5, %v205_v3 }
 0x160   :  { %v207_v5 = vsub.f32 1.5, %v206_v4 }
 0x161   :  { %v1649_v6 = vpop.eup %1648 }
 0x162   :  { %v208_v7 = vmul.f32 %v1647_v0, %v207_v5  ;;  %v216_v8 = vmul.f32 %v1649_v6, %v202_v1 }
 0x164   :  { %v209_v9 = vmul.f32 %v208_v7, %v201_v61  ;;  %v217_v10 = vmul.f32 %v1649_v6, %v216_v8 }
 0x166   :  { %v218_v11 = vmul.f32 0.5, %v217_v10  ;;  %v211_v12 = vsel %vm210_vm1, %v201_v61, %v209_v9 }
 0x167   :  { %v214_v18 = vsel %vm212_vm2, %v213_v15, %v211_v12 }
 0x168   :  { %v219_v14 = vsub.f32 1.5, %v218_v11  ;;  %v227_v33 = vmul.f32 %v214_v18, %v214_v18 }
 0x16a   :  { %v220_v17 = vmul.f32 %v1649_v6, %v219_v14  ;;  %v230_v38 = vsel %vm229_vm5, %v227_v33, 0.0  ;;  %v1931_v6 = vpop.permute.xlu1 %348 }
 0x16c   :  { %v221_v20 = vmul.f32 %v220_v17, %v202_v1 }
 0x16e   :  { %v223_v31 = vsel %vm222_vm3, %v202_v1, %v221_v20 }
 0x16f   :  { %v226_v34 = vsel %vm224_vm4, %v225_v27, %v223_v31 }
 0x170   :  { %v228_v35 = vmul.f32 %v226_v34, %v226_v34 }
 0x172   :  { %v231_v39 = vsel %vm229_vm5, %v228_v35, 0.0  ;;  %v1933_v7 = vpop.permute.xlu1 %353 }
 0x173   :  { %v232_v40 = vadd.f32 %v231_v39, %v230_v38 }
 0x175   :  { %233 = vadd.xlane.f32.xlu0 %v232_v40 }
 0x17a   :  { %v1935_v9 = vpop.permute.xlu1 %338 }
 0x182   :  { %v1937_v11 = vpop.permute.xlu1 %343 }
 0x189   :  { %318 = vperm.xlu0 %1639, %v63_v42  }
 0x18a   :  { %v1939_v14 = vpop.permute.xlu1 %328 }
 0x192   :  { %v1944_v27 = vpop.permute.xlu1 %333 }
 0x1e8   :  { %v234_v43 = vpop.xlane.xlu0 %233 }
 0x1e9   :  { %v235_v44 = vrot.slane %v234_v43, 4 }
 0x1eb   :  { %v236_v45 = vadd.f32 %v235_v44, %v234_v43 }
 0x1ed   :  { %v237_v46 = vrot.slane %v236_v45, 2 }
 0x1ef   :  { %v238_v47 = vadd.f32 %v237_v46, %v236_v45 }
 0x1f1   :  { %v239_v48 = vrot.slane %v238_v47, 1 }
 0x1f3   :  { %v240_v53 = vadd.f32 %v239_v48, %v238_v47 }
 0x1f5   :  { %1614 = vpush %v240_v53 }
 0x226   :  { %s1615_s15 = spop %1614 }
 0x227   :  { %v242_v54 = vstv %s1615_s15 }
 0x228   :  { %v243_v55 = vmax.f32 %v242_v54, 1e-30 }
 0x22a   :  { %1650 = vrsqrt.f32 %v243_v55  ;;  %vm250_vm7 = vweird.f32 %v243_v55 }
 0x230   :  { %v1651_v56 = vpop.eup %1650 }
 0x231   :  { %v245_v57 = vmul.f32 %v1651_v56, %v243_v55  ;;  %vm251_vm6 = vweird.f32 %v1651_v56 }
 0x232   :  { %vm252_vm8 = vmor %vm250_vm7, %vm251_vm6 }
 0x233   :  { %v246_v60 = vmul.f32 %v1651_v56, %v245_v57  ;;  %v1999_v57 = vpop.permute.xlu1 %323 }
 0x235   :  { %v247_v61 = vmul.f32 0.5, %v246_v60 }
 0x237   :  { %v248_v63 = vsub.f32 1.5, %v247_v61  ;;  %v2007_v61 = vpop.permute.xlu0 %318 }
 0x239   :  { %v249_v0 = vmul.f32 %v1651_v56, %v248_v63 }
 0x23b   :  { %v253_v1 = vsel %vm252_vm8, %v1651_v56, %v249_v0 }
 0x23c   :  { %v254_v2 = vmul.f32 0.5, %v253_v1 }
 0x23e   :  { %v271_v3 = vmul.f32 %v254_v2, %v214_v18  ;;  %v272_v4 = vmul.f32 %v254_v2, %v226_v34  ;;  %v1942_v20 = vmul.f32 %v254_v2, %v1845_v25  ;;  %v1947_v31 = vmul.f32 %v254_v2, %v1857_v28 }
 0x23f   :  { %v1951_v34 = vmul.f32 %v254_v2, %v1850_v26  ;;  %v1958_v39 = vmul.f32 %v254_v2, %v1862_v29  ;;  %v1961_v25 = vmul.f32 %v254_v2, %v1879_v37  ;;  %v1971_v26 = vmul.f32 %v254_v2, %v1884_v41 }
 0x240   :  { %v273_v5 = vpack.c.bf16 %v272_v4, %v271_v3  ;;  %v1955_v38 = vmul.f32 0.1, %v1942_v20  ;;  %v1965_v28 = vmul.f32 0.1, %v1947_v31  ;;  %v1985_v47 = vmul.f32 %v254_v2, %v1902_v52 }
 0x241   :  { %v1974_v43 = vmul.f32 0.1, %v1951_v34  ;;  %v1981_v45 = vmul.f32 0.1, %v1958_v39  ;;  %v1988_v41 = vmul.f32 0.1, %v1961_v25  ;;  %v2002_v52 = vmul.f32 %v254_v2, %v1897_v51 }
 0x242   :  { %294 = vmatpush.bf16.msra.mxu1 %v273_v5  ;;  %1613 = vmatpush.bf16.msra.mxu2 %v273_v5  ;;  %v2005_v60 = vmul.f32 0.1, %v1971_v26  ;;  %v2019_v51 = vmul.f32 0.1, %v1985_v47 }
 0x245   :  { %1558 = vmatmul.msk.bf16.vlgmr.msra.gmra.mxu1 %vm274_vm9, %v1800_v13  ;;  %1559 = vmatmul.msk.bf16.vlgmr.msra.gmra.mxu2 %vm274_vm9, %v1812_v16 }
 0x255   :  { %1560 = vmatmul.msk.bf16.gmra.mxu2 %vm274_vm9, %v1824_v19 }
 0x265   :  { %1561 = vmatmul.msk.bf16.gmra.mxu2 %vm274_vm9, %v1833_v21 }
 0x2c2   :  { %v296_v17 = vpop.f32.mrf.mxu1 }
 0x2c3   :  { %v356_v4 = vmul.f32 %v2007_v61, %v296_v17 }
 0x2c8   :  { %v301_v8 = vpop.f32.mrf.mxu2 }
 0x2c9   :  { %v358_v53 = vmul.f32 %v1939_v14, %v301_v8 }
 0x2ca   :  { %v298_v48 = vpop.f32.mrf.mxu1 }
 0x2cb   :  { %v357_v63 = vmul.f32 %v1999_v57, %v298_v48  ;;  %v2022_v2 = vadd.f32 %v358_v53, %v2005_v60 }
 0x2d0   :  { %v303_v10 = vpop.f32.mrf.mxu2 }
 0x2d1   :  { %v359_v29 = vmul.f32 %v1944_v27, %v303_v10 }
 0x2d3   :  { %v2011_v0 = vadd.f32 %v359_v29, %v1988_v41 }
 0x2d5   :  { %v375_v17 = vmul.f32 %v2011_v0, %v1874_v36 }
 0x2d8   :  { %v306_v12 = vpop.f32.mrf.mxu2 }
 0x2d9   :  { %v360_v40 = vmul.f32 %v1935_v9, %v306_v12  ;;  %v2027_v12 = vmul.f32 0.1, %v2002_v52 }
 0x2db   :  { %v1992_v54 = vadd.f32 %v360_v40, %v1974_v43  ;;  %2739 = vst [vmem:[#allocation8_spill] sm:$0xff] %v2027_v12 }
 0x2dd   :  { %v376_v10 = vmul.f32 %v1992_v54, %v1836_v22 }
 0x2df   :  { %v384_v40 = vmul.f32 %v376_v10, %v376_v10 }
 0x2e0   :  { %v308_v15 = vpop.f32.mrf.mxu2 }
 0x2e1   :  { %v361_v35 = vmul.f32 %v1937_v11, %v308_v15  ;;  %v2030_v15 = vadd.f32 %v357_v63, %v2019_v51 }
 0x2e3   :  { %v1978_v37 = vadd.f32 %v361_v35, %v1965_v28  ;;  %v2035_v35 = vadd.f32 %v356_v4, %v2027_v12  ;;  %v373_v48 = vmul.f32 %v2030_v15, %v1890_v49 }
 0x2e5   :  { %v377_v3 = vmul.f32 %v1978_v37, %v1864_v30 }
 0x2e8   :  { %v311_v18 = vpop.f32.mrf.mxu2 }
 0x2e9   :  { %v362_v33 = vmul.f32 %v1931_v6, %v311_v18 }
 0x2eb   :  { %v1968_v42 = vadd.f32 %v362_v33, %v1955_v38  ;;  %v385_v33 = vmul.f32 %v377_v3, %v377_v3 }
 0x2ed   :  { %v378_v56 = vmul.f32 %v1968_v42, %v1840_v24  ;;  %v390_v29 = vpack.c.bf16 %v385_v33, %v384_v40 }
 0x2ef   :  { %v386_v5 = vmul.f32 %v378_v56, %v378_v56  ;;  %v372_v56 = vmul.f32 %v2035_v35, %v1892_v50 }
 0x2f0   :  { %v313_v44 = vpop.f32.mrf.mxu2 }
 0x2f1   :  { %v363_v46 = vmul.f32 %v1933_v7, %v313_v44  ;;  %v374_v44 = vmul.f32 %v2022_v2, %v1838_v23  ;;  %v380_v3 = vmul.f32 %v372_v56, %v372_v56 }
 0x2f3   :  { %v1995_v55 = vadd.f32 %v363_v46, %v1981_v45  ;;  %v383_v46 = vmul.f32 %v375_v17, %v375_v17  ;;  %v382_v53 = vmul.f32 %v374_v44, %v374_v44 }
 0x2f5   :  { %v379_v1 = vmul.f32 %v1995_v55, %v1868_v32  ;;  %v389_v63 = vpack.c.bf16 %v383_v46, %v382_v53 }
 0x2f7   :  { %v387_v8 = vmul.f32 %v379_v1, %v379_v1  ;;  %v381_v1 = vmul.f32 %v373_v48, %v373_v48 }
 0x2f9   :  { %v391_v18 = vpack.c.bf16 %v387_v8, %v386_v5  ;;  %v388_v4 = vpack.c.bf16 %v381_v1, %v380_v3 }
 0x2fb   :  { %396 = vmatpush.bf16.msrb.mxu1 %v391_v18 }
 0x2ff   :  { %397 = vmatpush.bf16.msrb.mxu1 %v390_v29 }
 0x303   :  { %398 = vmatpush.bf16.msrb.mxu1 %v389_v63 }
 0x307   :  { %399 = vmatpush.bf16.msrb.mxu1 %v388_v4 }
 0x30a   :  { %1562 = vmatmul.msk.bf16.vlgmr.msrb.gmra.mxu1 %vm173_vm0, %v1908_v58 }
 0x387   :  { %v401_v5 = vpop.f32.mrf.mxu1 }
 0x388   :  { %v406_v8 = vmul.f32 %v401_v5, %v1912_v59 }
 0x38a   :  { %1652 = vrsqrt.f32 %v406_v8  ;;  %vm415_vm10 = vcmp.eq.f32.partialorder %v406_v8, inf  ;;  %v418_v5 = vand.u32 2147483648, %v406_v8  ;;  %vm417_vm11 = vcmp.eq.f32.partialorder %v406_v8, 0.0 }
 0x38f   :  { %v403_v10 = vpop.f32.mrf.mxu1 }
 0x390   :  { %v1653_v18 = vpop.eup %1652  ;;  %v407_v33 = vmul.f32 %v403_v10, %v1915_v62 }
 0x391   :  { %v409_v17 = vmul.f32 %v1653_v18, %v406_v8 }
 0x392   :  { %1654 = vrsqrt.f32 %v407_v33  ;;  %vm427_vm12 = vcmp.eq.f32.partialorder %v407_v33, inf  ;;  %v430_v10 = vand.u32 2147483648, %v407_v33  ;;  %vm429_vm13 = vcmp.eq.f32.partialorder %v407_v33, 0.0 }
 0x393   :  { %v410_v40 = vmul.f32 %v1653_v18, %v409_v17 }
 0x395   :  { %v411_v44 = vmul.f32 0.5, %v410_v40 }
 0x397   :  { %v412_v29 = vsub.f32 1.5, %v411_v44 }
 0x398   :  { %v1655_v46 = vpop.eup %1654 }
 0x399   :  { %v413_v48 = vmul.f32 %v1653_v18, %v412_v29  ;;  %v421_v53 = vmul.f32 %v1655_v46, %v407_v33 }
 0x39b   :  { %v414_v56 = vmul.f32 %v413_v48, %v406_v8  ;;  %v422_v63 = vmul.f32 %v1655_v46, %v421_v53 }
 0x39d   :  { %v423_v1 = vmul.f32 0.5, %v422_v63  ;;  %v416_v3 = vsel %vm415_vm10, %v406_v8, %v414_v56 }
 0x39e   :  { %v419_v58 = vsel %vm417_vm11, %v418_v5, %v416_v3 }
 0x39f   :  { %v424_v4 = vsub.f32 1.5, %v423_v1  ;;  %v432_v17 = vmul.f32 %v419_v58, %v419_v58 }
 0x3a1   :  { %v425_v59 = vmul.f32 %v1655_v46, %v424_v4  ;;  %v434_v18 = vsel %vm229_vm5, %v432_v17, 0.0 }
 0x3a3   :  { %v426_v50 = vmul.f32 %v425_v59, %v407_v33 }
 0x3a5   :  { %v428_v62 = vsel %vm427_vm12, %v407_v33, %v426_v50 }
 0x3a6   :  { %v431_v40 = vsel %vm429_vm13, %v430_v10, %v428_v62 }
 0x3a7   :  { %v433_v44 = vmul.f32 %v431_v40, %v431_v40 }
 0x3a9   :  { %v435_v29 = vsel %vm229_vm5, %v433_v44, 0.0 }
 0x3aa   :  { %v436_v48 = vadd.f32 %v435_v29, %v434_v18 }
 0x3ac   :  { %437 = vadd.xlane.f32.xlu1 %v436_v48 }
 0x41f   :  { %v438_v53 = vpop.xlane.xlu1 %437 }
 0x420   :  { %v439_v56 = vrot.slane %v438_v53, 4 }
 0x422   :  { %v440_v63 = vadd.f32 %v439_v56, %v438_v53 }
 0x424   :  { %v441_v8 = vrot.slane %v440_v63, 2 }
 0x426   :  { %v442_v46 = vadd.f32 %v441_v8, %v440_v63 }
 0x428   :  { %v443_v1 = vrot.slane %v442_v46, 1 }
 0x42a   :  { %v444_v59 = vadd.f32 %v443_v1, %v442_v46 }
 0x42c   :  { %1616 = vpush %v444_v59 }
 0x45d   :  { %s1617_s3 = spop %1616 }
 0x45e   :  { %v446_v50 = vstv %s1617_s3 }
 0x45f   :  { %v447_v33 = vmax.f32 %v446_v50, 1e-30 }
 0x461   :  { %1656 = vrsqrt.f32 %v447_v33  ;;  %vm454_vm15 = vweird.f32 %v447_v33 }
 0x467   :  { %v1657_v62 = vpop.eup %1656 }
 0x468   :  { %v449_v3 = vmul.f32 %v1657_v62, %v447_v33  ;;  %vm455_vm14 = vweird.f32 %v1657_v62 }
 0x469   :  { %vm456_vm1 = vmor %vm454_vm15, %vm455_vm14 }
 0x46a   :  { %v450_v4 = vmul.f32 %v1657_v62, %v449_v3 }
 0x46c   :  { %v451_v5 = vmul.f32 0.5, %v450_v4 }
 0x46e   :  { %v452_v10 = vsub.f32 1.5, %v451_v5 }
 0x470   :  { %v453_v17 = vmul.f32 %v1657_v62, %v452_v10 }
 0x472   :  { %v457_v44 = vsel %vm456_vm1, %v1657_v62, %v453_v17 }
 0x473   :  { %v458_v18 = vmul.f32 0.5, %v457_v44 }
 0x475   :  { %v2049_v29 = vmul.f32 %v458_v18, %v419_v58  ;;  %v2051_v48 = vmul.f32 %v458_v18, %v431_v40  ;;  %v2054_v53 = vmul.f32 %v458_v18, %v2035_v35  ;;  %v2057_v56 = vmul.f32 %v458_v18, %v2030_v15 }
 0x476   :  { %v2060_v63 = vmul.f32 %v458_v18, %v2022_v2  ;;  %v2063_v8 = vmul.f32 %v458_v18, %v2011_v0  ;;  %v2068_v58 = vmul.f32 %v458_v18, %v1992_v54  ;;  %v2077_v2 = vmul.f32 %v458_v18, %v1978_v37 }
 0x477   :  { %v561_v46 = vpack.c.bf16 %v2051_v48, %v2049_v29  ;;  %v510_v40 = vmul.f32 %v2054_v53, %v2054_v53  ;;  %v511_v35 = vmul.f32 %v2057_v56, %v2057_v56  ;;  %v2084_v59 = vmul.f32 %v458_v18, %v1968_v42 }
 0x478   :  { %v512_v15 = vmul.f32 %v2060_v63, %v2060_v63  ;;  %v513_v0 = vmul.f32 %v2063_v8, %v2063_v8  ;;  %v514_v50 = vmul.f32 %v2068_v58, %v2068_v58  ;;  %v469_v37 = vsub.f32 %v2054_v53, %v2002_v52 }
 0x479   :  { %569 = vmatpush.bf16.msra.mxu3 %v561_v46  ;;  %v518_v1 = vsel %vm229_vm5, %v510_v40, 0.0  ;;  %v519_v54 = vsel %vm229_vm5, %v511_v35, 0.0  ;;  %v470_v3 = vsub.f32 %v2057_v56, %v1985_v47  ;;  %v471_v4 = vsub.f32 %v2060_v63, %v1971_v26 }
 0x47a   :  { %v520_v33 = vadd.f32 %v519_v54, %v518_v1  ;;  %v521_v62 = vsel %vm229_vm5, %v512_v15, 0.0  ;;  %v472_v42 = vsub.f32 %v2063_v8, %v1961_v25  ;;  %v2100_v5 = vmul.f32 %v458_v18, %v1995_v55 }
 0x47b   :  { %v515_v10 = vmul.f32 %v2077_v2, %v2077_v2  ;;  %v523_v44 = vsel %vm229_vm5, %v513_v0, 0.0  ;;  %v473_v52 = vsub.f32 %v2068_v58, %v1951_v34  ;;  %v477_v46 = vmul.f32 %v469_v37, %v469_v37 }
 0x47c   :  { %1564 = vmatmul.msk.bf16.vlgmr.msra.gmra.mxu3 %vm274_vm9, %v1800_v13  ;;  %v522_v17 = vadd.f32 %v521_v62, %v520_v33  ;;  %v478_v47 = vmul.f32 %v470_v3, %v470_v3  ;;  %v479_v40 = vmul.f32 %v471_v4, %v471_v4  ;;  %v516_v26 = vmul.f32 %v2084_v59, %v2084_v59 }
 0x47d   :  { %v525_v25 = vsel %vm229_vm5, %v514_v50, 0.0  ;;  %v474_v55 = vsub.f32 %v2077_v2, %v1947_v31  ;;  %v480_v18 = vmul.f32 %v472_v42, %v472_v42  ;;  %v485_v15 = vsel %vm229_vm5, %v477_v46, 0.0 }
 0x47e   :  { %v524_v35 = vadd.f32 %v523_v44, %v522_v17  ;;  %v486_v0 = vsel %vm229_vm5, %v478_v47, 0.0  ;;  %v517_v34 = vmul.f32 %v2100_v5, %v2100_v5  ;;  %v527_v33 = vsel %vm229_vm5, %v515_v10, 0.0 }
 0x47f   :  { %v487_v54 = vadd.f32 %v486_v0, %v485_v15  ;;  %v475_v62 = vsub.f32 %v2084_v59, %v1942_v20  ;;  %v481_v37 = vmul.f32 %v473_v52, %v473_v52  ;;  %v488_v50 = vsel %vm229_vm5, %v479_v40, 0.0 }
 0x480   :  { %v526_v1 = vadd.f32 %v525_v25, %v524_v35  ;;  %v529_v4 = vsel %vm229_vm5, %v516_v26, 0.0  ;;  %v476_v42 = vsub.f32 %v2100_v5, %v1958_v39  ;;  %v482_v17 = vmul.f32 %v474_v55, %v474_v55 }
 0x481   :  { %v489_v31 = vadd.f32 %v488_v50, %v487_v54  ;;  %v490_v44 = vsel %vm229_vm5, %v480_v18, 0.0  ;;  %v531_v10 = vsel %vm229_vm5, %v517_v34, 0.0  ;;  %v483_v35 = vmul.f32 %v475_v62, %v475_v62 }
 0x482   :  { %v528_v3 = vadd.f32 %v527_v33, %v526_v1  ;;  %v492_v20 = vsel %vm229_vm5, %v481_v37, 0.0  ;;  %v484_v40 = vmul.f32 %v476_v42, %v476_v42  ;;  %v494_v15 = vsel %vm229_vm5, %v482_v17, 0.0 }
 0x483   :  { %v491_v47 = vadd.f32 %v490_v44, %v489_v31  ;;  %v496_v0 = vsel %vm229_vm5, %v483_v35, 0.0 }
 0x484   :  { %v530_v46 = vadd.f32 %v529_v4, %v528_v3  ;;  %v498_v55 = vsel %vm229_vm5, %v484_v40, 0.0 }
 0x485   :  { %v493_v25 = vadd.f32 %v492_v20, %v491_v47 }
 0x486   :  { %v532_v52 = vadd.f32 %v531_v10, %v530_v46 }
 0x487   :  { %v495_v26 = vadd.f32 %v494_v15, %v493_v25 }
 0x488   :  { %533 = vadd.xlane.f32.xlu2 %v532_v52 }
 0x489   :  { %v497_v39 = vadd.f32 %v496_v0, %v495_v26 }
 0x48b   :  { %v499_v18 = vadd.f32 %v498_v55, %v497_v39 }
 0x48c   :  { %1565 = vmatmul.msk.bf16.gmra.mxu3 %vm274_vm9, %v1812_v16 }
 0x48d   :  { %500 = vadd.xlane.f32.xlu0 %v499_v18 }
 0x49c   :  { %1566 = vmatmul.msk.bf16.gmra.mxu3 %vm274_vm9, %v1824_v19 }
 0x4ac   :  { %1567 = vmatmul.msk.bf16.gmra.mxu3 %vm274_vm9, %v1833_v21 }
 0x4fb   :  { %v534_v34 = vpop.xlane.xlu2 %533 }
 0x4fc   :  { %v535_v1 = vrot.slane %v534_v34, 4 }
 0x4fe   :  { %v536_v54 = vadd.f32 %v535_v1, %v534_v34 }
 0x4ff   :  { %v571_v33 = vpop.f32.mrf.mxu3 }
 0x500   :  { %v537_v62 = vrot.slane %v536_v54, 2  ;;  %v501_v37 = vpop.xlane.xlu0 %500 }
 0x501   :  { %v502_v50 = vrot.slane %v501_v37, 4 }
 0x502   :  { %v538_v31 = vadd.f32 %v537_v62, %v536_v54 }
 0x503   :  { %v503_v3 = vadd.f32 %v502_v50, %v501_v37 }
 0x504   :  { %v539_v17 = vrot.slane %v538_v31, 1 }
 0x505   :  { %v504_v4 = vrot.slane %v503_v3, 2 }
 0x506   :  { %v540_v47 = vadd.f32 %v539_v17, %v538_v31  ;;  %v591_v31 = vmul.f32 %v571_v33, %v2007_v61 }
 0x507   :  { %v573_v42 = vpop.f32.mrf.mxu3  ;;  %v505_v16 = vadd.f32 %v504_v4, %v503_v3 }
 0x508   :  { %v592_v62 = vmul.f32 %v573_v42, %v1999_v57 }
 0x509   :  { %v506_v44 = vrot.slane %v505_v16, 1 }
 0x50a   :  { %v2170_v42 = vadd.f32 %v592_v62, %v2019_v51  ;;  %v2741_v62 = vld [vmem:[#allocation5_spill] sm:$0xff] }
 0x50b   :  { %v507_v46 = vadd.f32 %v506_v44, %v505_v16 }
 0x50d   :  { %1618 = vpush %v507_v46 }
 0x50e   :  { %1620 = vpush %v540_v47 }
 0x50f   :  { %v576_v19 = vpop.f32.mrf.mxu3 }
 0x510   :  { %v593_v18 = vmul.f32 %v576_v19, %v1939_v14 }
 0x512   :  { %v2165_v4 = vadd.f32 %v593_v18, %v2005_v60 }
 0x517   :  { %v578_v21 = vpop.f32.mrf.mxu3 }
 0x518   :  { %v594_v0 = vmul.f32 %v578_v21, %v1944_v27  ;;  %v2175_v21 = vadd.f32 %v591_v31, %v2027_v12 }
 0x51a   :  { %v2157_v37 = vadd.f32 %v594_v0, %v1988_v41 }
 0x51c   :  { %v610_v19 = vmul.f32 %v2157_v37, %v1874_v36 }
 0x51f   :  { %v581_v10 = vpop.f32.mrf.mxu3 }
 0x520   :  { %v595_v40 = vmul.f32 %v581_v10, %v1935_v9  ;;  %v609_v10 = vmul.f32 %v2165_v4, %v1838_v23 }
 0x522   :  { %v2148_v34 = vadd.f32 %v595_v40, %v1974_v43  ;;  %v2740_v40 = vld [vmem:[#allocation4_spill] sm:$0xff] }
 0x524   :  { %v611_v44 = vmul.f32 %v2148_v34, %v1836_v22 }
 0x526   :  { %v619_v33 = vmul.f32 %v611_v44, %v611_v44  ;;  %v2743_v44 = vld [vmem:[#allocation7_spill] sm:$0xff] }
 0x527   :  { %v583_v35 = vpop.f32.mrf.mxu3 }
 0x528   :  { %v596_v25 = vmul.f32 %v583_v35, %v1937_v11 }
 0x52a   :  { %v2143_v39 = vadd.f32 %v596_v25, %v1965_v28  ;;  %v617_v25 = vmul.f32 %v609_v10, %v609_v10 }
 0x52c   :  { %v612_v3 = vmul.f32 %v2143_v39, %v1864_v30 }
 0x52e   :  { %v620_v47 = vmul.f32 %v612_v3, %v612_v3  ;;  %v2742_v3 = vld [vmem:[#allocation6_spill] sm:$0xff] }
 0x52f   :  { %v586_v20 = vpop.f32.mrf.mxu3 }
 0x530   :  { %v597_v52 = vmul.f32 %v586_v20, %v1931_v6  ;;  %v625_v35 = vpack.c.bf16 %v620_v47, %v619_v33  ;;  %v618_v20 = vmul.f32 %v610_v19, %v610_v19 }
 0x532   :  { %v2139_v15 = vadd.f32 %v597_v52, %v1955_v38  ;;  %v608_v52 = vmul.f32 %v2170_v42, %v1890_v49  ;;  %v624_v0 = vpack.c.bf16 %v618_v20, %v617_v25 }
 0x534   :  { %v613_v54 = vmul.f32 %v2139_v15, %v1840_v24 }
 0x536   :  { %v621_v16 = vmul.f32 %v613_v54, %v613_v54 }
 0x537   :  { %v588_v26 = vpop.f32.mrf.mxu3 }
 0x538   :  { %v598_v55 = vmul.f32 %v588_v26, %v1933_v7  ;;  %v607_v26 = vmul.f32 %v2175_v21, %v2740_v40 }
 0x53a   :  { %v2151_v1 = vadd.f32 %v598_v55, %v1981_v45  ;;  %v616_v55 = vmul.f32 %v608_v52, %v608_v52  ;;  %v615_v18 = vmul.f32 %v607_v26, %v607_v26 }
 0x53c   :  { %v614_v50 = vmul.f32 %v2151_v1, %v1868_v32  ;;  %v623_v54 = vpack.c.bf16 %v616_v55, %v615_v18 }
 0x53e   :  { %v622_v17 = vmul.f32 %v614_v50, %v614_v50  ;;  %s1619_s16 = spop %1618 }
 0x53f   :  { %s1621_s17 = spop %1620 }
 0x540   :  { %v626_v46 = vpack.c.bf16 %v622_v17, %v621_v16 }
 0x542   :  { %631 = vmatpush.bf16.msrb.mxu0 %v626_v46 }
 0x546   :  { %632 = vmatpush.bf16.msrb.mxu0 %v625_v35 }
 0x54a   :  { %633 = vmatpush.bf16.msrb.mxu0 %v624_v0 }
 0x54e   :  { %634 = vmatpush.bf16.msrb.mxu0 %v623_v54 }
 0x551   :  { %1568 = vmatmul.msk.bf16.vlgmr.msrb.gmra.mxu0 %vm173_vm0, %v2741_v62 }
 0x5ce   :  { %v636_v50 = vpop.f32.mrf.mxu0 }
 0x5cf   :  { %v641_v31 = vmul.f32 %v636_v50, %v2742_v3 }
 0x5d1   :  { %1658 = vrsqrt.f32 %v641_v31  ;;  %vm650_vm2 = vcmp.eq.f32.partialorder %v641_v31, inf  ;;  %v653_v54 = vand.u32 2147483648, %v641_v31  ;;  %vm652_vm3 = vcmp.eq.f32.partialorder %v641_v31, 0.0 }
 0x5d6   :  { %v638_v16 = vpop.f32.mrf.mxu0 }
 0x5d7   :  { %v1659_v17 = vpop.eup %1658  ;;  %v642_v46 = vmul.f32 %v638_v16, %v2743_v44 }
 0x5d8   :  { %v644_v47 = vmul.f32 %v1659_v17, %v641_v31 }
 0x5d9   :  { %1660 = vrsqrt.f32 %v642_v46  ;;  %vm662_vm4 = vcmp.eq.f32.partialorder %v642_v46, inf  ;;  %v665_v16 = vand.u32 2147483648, %v642_v46  ;;  %vm664_vm6 = vcmp.eq.f32.partialorder %v642_v46, 0.0 }
 0x5da   :  { %v645_v19 = vmul.f32 %v1659_v17, %v644_v47 }
 0x5dc   :  { %v646_v33 = vmul.f32 0.5, %v645_v19 }
 0x5de   :  { %v647_v10 = vsub.f32 1.5, %v646_v33 }
 0x5df   :  { %v1661_v35 = vpop.eup %1660 }
 0x5e0   :  { %v648_v20 = vmul.f32 %v1659_v17, %v647_v10  ;;  %v656_v52 = vmul.f32 %v1661_v35, %v642_v46 }
 0x5e2   :  { %v649_v25 = vmul.f32 %v648_v20, %v641_v31  ;;  %v657_v26 = vmul.f32 %v1661_v35, %v656_v52 }
 0x5e4   :  { %v658_v0 = vmul.f32 0.5, %v657_v26  ;;  %v651_v55 = vsel %vm650_vm2, %v641_v31, %v649_v25 }
 0x5e5   :  { %v654_v3 = vsel %vm652_vm3, %v653_v54, %v651_v55 }
 0x5e6   :  { %v659_v18 = vsub.f32 1.5, %v658_v0  ;;  %v667_v47 = vmul.f32 %v654_v3, %v654_v3 }
 0x5e8   :  { %v660_v50 = vmul.f32 %v1661_v35, %v659_v18  ;;  %v669_v17 = vsel %vm229_vm5, %v667_v47, 0.0  ;;  %v509_v47 = vstv %s1619_s16 }
 0x5ea   :  { %v661_v62 = vmul.f32 %v660_v50, %v642_v46 }
 0x5ec   :  { %v663_v44 = vsel %vm662_vm4, %v642_v46, %v661_v62  ;;  %v542_v46 = vstv %s1621_s17 }
 0x5ed   :  { %v666_v19 = vsel %vm664_vm6, %v665_v16, %v663_v44  ;;  %v556_v54 = vmul.f32 1e-12, %v542_v46  ;;  %v2295_v46 = vld [vmem:[%s2707_s0 + $0x10] sm:$0xff] }
 0x5ee   :  { %v668_v33 = vmul.f32 %v666_v19, %v666_v19 }
 0x5ef   :  { %vm557_vm7 = vcmp.lt.f32.partialorder %v509_v47, %v556_v54 }
 0x5f0   :  { %v670_v10 = vsel %vm229_vm5, %v668_v33, 0.0 }
 0x5f1   :  { %v671_v20 = vadd.f32 %v670_v10, %v669_v17  ;;  %v2725_v10 = vmov 0.0  }
 0x5f3   :  { %672 = vadd.xlane.f32.xlu1 %v671_v20  ;;  %v2190_v20 = vsel %vm557_vm7, 1.0, %v2725_v10 }
 0x5f4   :  { %2744 = vst [vmem:[#allocation9_spill] sm:$0xff] %v2190_v20 }
 0x666   :  { %v673_v52 = vpop.xlane.xlu1 %672 }
 0x667   :  { %v674_v25 = vrot.slane %v673_v52, 4 }
 0x669   :  { %v675_v26 = vadd.f32 %v674_v25, %v673_v52  ;;  %v2724_v25 = vmax.f32 %v2190_v20, 0.0 }
 0x66b   :  { %v676_v31 = vrot.slane %v675_v26, 2  ;;  %vm2197_vm12 = vcmp.gt.f32.partialorder %v2724_v25, 0.0 }
 0x66d   :  { %v677_v35 = vadd.f32 %v676_v31, %v675_v26 }
 0x66f   :  { %v678_v0 = vrot.slane %v677_v35, 1 }
 0x671   :  { %v679_v55 = vadd.f32 %v678_v0, %v677_v35 }
 0x673   :  { %1622 = vpush %v679_v55 }
 0x6a4   :  { %s1623_s18 = spop %1622 }
 0x6a5   :  { %v681_v62 = vstv %s1623_s18 }
 0x6a6   :  { %v682_v44 = vmax.f32 %v681_v62, 1e-30 }
 0x6a8   :  { %1662 = vrsqrt.f32 %v682_v44  ;;  %vm689_vm10 = vweird.f32 %v682_v44 }
 0x6ae   :  { %v1663_v18 = vpop.eup %1662 }
 0x6af   :  { %v684_v50 = vmul.f32 %v1663_v18, %v682_v44  ;;  %vm690_vm8 = vweird.f32 %v1663_v18 }
 0x6b0   :  { %vm691_vm11 = vmor %vm689_vm10, %vm690_vm8 }
 0x6b1   :  { %v685_v16 = vmul.f32 %v1663_v18, %v684_v50 }
 0x6b3   :  { %v686_v33 = vmul.f32 0.5, %v685_v16 }
 0x6b5   :  { %v687_v17 = vsub.f32 1.5, %v686_v33 }
 0x6b7   :  { %v688_v52 = vmul.f32 %v1663_v18, %v687_v17 }
 0x6b9   :  { %v692_v26 = vsel %vm691_vm11, %v1663_v18, %v688_v52 }
 0x6ba   :  { %v693_v31 = vmul.f32 0.5, %v692_v26 }
 0x6bc   :  { %v702_v35 = vmul.f32 %v693_v31, %v654_v3  ;;  %v703_v0 = vmul.f32 %v693_v31, %v666_v19  ;;  %v694_v55 = vmul.f32 %v693_v31, %v2175_v21  ;;  %v695_v62 = vmul.f32 %v693_v31, %v2170_v42 }
 0x6bd   :  { %v696_v54 = vmul.f32 %v693_v31, %v2165_v4  ;;  %v697_v44 = vmul.f32 %v693_v31, %v2157_v37  ;;  %v698_v50 = vmul.f32 %v693_v31, %v2148_v34  ;;  %v699_v21 = vmul.f32 %v693_v31, %v2143_v39 }
 0x6be   :  { %v2207_v3 = vsel %vm2197_vm12, %v2049_v29, %v702_v35  ;;  %v2212_v42 = vsel %vm2197_vm12, %v2051_v48, %v703_v0  ;;  %v700_v19 = vmul.f32 %v693_v31, %v2139_v15  ;;  %v745_v37 = vmul.f32 %v694_v55, %v694_v55 }
 0x6bf   :  { %2747 = vst [vmem:[#allocation10_spill] sm:$0xff] %v2207_v3  ;;  %v796_v4 = vpack.c.bf16 %v2212_v42, %v2207_v3  ;;  %v746_v18 = vmul.f32 %v695_v62, %v695_v62  ;;  %v747_v34 = vmul.f32 %v696_v54, %v696_v54  ;;  %v748_v16 = vmul.f32 %v697_v44, %v697_v44 }
 0x6c0   :  { %2748 = vst [vmem:[#allocation11_spill] sm:$0xff] %v2212_v42  ;;  %v753_v29 = vsel %vm229_vm5, %v745_v37, 0.0  ;;  %v701_v33 = vmul.f32 %v693_v31, %v2151_v1  ;;  %v749_v48 = vmul.f32 %v698_v50, %v698_v50  ;;  %v750_v17 = vmul.f32 %v699_v21, %v699_v21 }
 0x6c1   :  { %804 = vmatpush.bf16.msrb.mxu2 %v796_v4  ;;  %v754_v47 = vsel %vm229_vm5, %v746_v18, 0.0  ;;  %v751_v39 = vmul.f32 %v700_v19, %v700_v19  ;;  %v756_v15 = vsel %vm229_vm5, %v747_v34, 0.0  ;;  %v704_v26 = vsub.f32 %v694_v55, %v2054_v53 }
 0x6c2   :  { %v755_v52 = vadd.f32 %v754_v47, %v753_v29  ;;  %v705_v35 = vsub.f32 %v695_v62, %v2057_v56  ;;  %v706_v4 = vsub.f32 %v696_v54, %v2060_v63  ;;  %v707_v37 = vsub.f32 %v697_v44, %v2063_v8 }
 0x6c3   :  { %v758_v1 = vsel %vm229_vm5, %v748_v16, 0.0  ;;  %v708_v31 = vsub.f32 %v698_v50, %v2068_v58  ;;  %v709_v18 = vsub.f32 %v699_v21, %v2077_v2  ;;  %v712_v29 = vmul.f32 %v704_v26, %v704_v26 }
 0x6c4   :  { %1570 = vmatmul.msk.bf16.vlgmr.msrb.gmra.mxu2 %vm274_vm9, %v1800_v13  ;;  %v757_v0 = vadd.f32 %v756_v15, %v755_v52  ;;  %v713_v47 = vmul.f32 %v705_v35, %v705_v35  ;;  %v714_v25 = vmul.f32 %v706_v4, %v706_v4  ;;  %v715_v10 = vmul.f32 %v707_v37, %v707_v37 }
 0x6c5   :  { %v752_v42 = vmul.f32 %v701_v33, %v701_v33  ;;  %v760_v3 = vsel %vm229_vm5, %v749_v48, 0.0  ;;  %v762_v13 = vsel %vm229_vm5, %v750_v17, 0.0  ;;  %v764_v52 = vsel %vm229_vm5, %v751_v39, 0.0 }
 0x6c6   :  { %v759_v34 = vadd.f32 %v758_v1, %v757_v0  ;;  %v710_v20 = vsub.f32 %v700_v19, %v2084_v59  ;;  %v720_v16 = vsel %vm229_vm5, %v712_v29, 0.0  ;;  %v721_v40 = vsel %vm229_vm5, %v713_v47, 0.0 }
 0x6c7   :  { %v711_v26 = vsub.f32 %v701_v33, %v2100_v5  ;;  %v716_v0 = vmul.f32 %v708_v31, %v708_v31  ;;  %v717_v35 = vmul.f32 %v709_v18, %v709_v18  ;;  %v722_v4 = vadd.f32 %v721_v40, %v720_v16 }
 0x6c8   :  { %v761_v15 = vadd.f32 %v760_v3, %v759_v34  ;;  %v723_v1 = vsel %vm229_vm5, %v714_v25, 0.0  ;;  %v725_v48 = vsel %vm229_vm5, %v715_v10, 0.0  ;;  %v2243_v3 = vsel %vm2197_vm12, %v2054_v53, %v694_v55 }
 0x6c9   :  { %v724_v17 = vadd.f32 %v723_v1, %v722_v4  ;;  %v2248_v39 = vsel %vm2197_vm12, %v2057_v56, %v695_v62  ;;  %v2253_v40 = vsel %vm2197_vm12, %v2060_v63, %v696_v54  ;;  %v2258_v10 = vsel %vm2197_vm12, %v2063_v8, %v697_v44 }
 0x6ca   :  { %v763_v37 = vadd.f32 %v762_v13, %v761_v15  ;;  %v2263_v53 = vsel %vm2197_vm12, %v2068_v58, %v698_v50  ;;  %v2268_v56 = vsel %vm2197_vm12, %v2077_v2, %v699_v21  ;;  %v2273_v63 = vsel %vm2197_vm12, %v2084_v59, %v700_v19 }
 0x6cb   :  { %v766_v55 = vsel %vm229_vm5, %v752_v42, 0.0  ;;  %v726_v8 = vadd.f32 %v725_v48, %v724_v17  ;;  %v2279_v62 = vsel %vm2197_vm12, %v2100_v5, %v701_v33  ;;  %v718_v54 = vmul.f32 %v710_v20, %v710_v20  ;;  %v2288_v5 = vld [vmem:[%s2707_s0 + $0x8] sm:$0xff]  ;;  %v2302_v33 = vld [vmem:[%s2707_s0 + $0x18] sm:$0xff] }
 0x6cc   :  { %v765_v25 = vadd.f32 %v764_v52, %v763_v37  ;;  %v727_v44 = vsel %vm229_vm5, %v716_v0, 0.0  ;;  %v719_v2 = vmul.f32 %v711_v26, %v711_v26  ;;  %v729_v21 = vsel %vm229_vm5, %v717_v35, 0.0 }
 0x6cd   :  { %v728_v50 = vadd.f32 %v727_v44, %v726_v8  ;;  %v731_v59 = vsel %vm229_vm5, %v718_v54, 0.0 }
 0x6ce   :  { %v767_v58 = vadd.f32 %v766_v55, %v765_v25  ;;  %v733_v42 = vsel %vm229_vm5, %v719_v2, 0.0 }
 0x6cf   :  { %v730_v31 = vadd.f32 %v729_v21, %v728_v50 }
 0x6d0   :  { %768 = vadd.xlane.f32.xlu1 %v767_v58 }
 0x6d1   :  { %v732_v19 = vadd.f32 %v731_v59, %v730_v31 }
 0x6d3   :  { %v734_v20 = vadd.f32 %v733_v42, %v732_v19 }
 0x6d4   :  { %1571 = vmatmul.msk.bf16.gmra.mxu2 %vm274_vm9, %v2288_v5 }
 0x6d5   :  { %735 = vadd.xlane.f32.xlu0 %v734_v20 }
 0x6e4   :  { %1572 = vmatmul.msk.bf16.gmra.mxu2 %vm274_vm9, %v2295_v46 }
 0x6f4   :  { %1573 = vmatmul.msk.bf16.gmra.mxu2 %vm274_vm9, %v2302_v33 }
 0x743   :  { %v769_v18 = vpop.xlane.xlu1 %768 }
 0x744   :  { %v770_v29 = vrot.slane %v769_v18, 4 }
 0x746   :  { %v771_v34 = vadd.f32 %v770_v29, %v769_v18 }
 0x747   :  { %v806_v47 = vpop.f32.mrf.mxu2 }
 0x748   :  { %v772_v13 = vrot.slane %v771_v34, 2  ;;  %v736_v52 = vpop.xlane.xlu0 %735 }
 0x749   :  { %v737_v15 = vrot.slane %v736_v52, 4 }
 0x74a   :  { %v773_v26 = vadd.f32 %v772_v13, %v771_v34 }
 0x74b   :  { %v738_v16 = vadd.f32 %v737_v15, %v736_v52 }
 0x74c   :  { %v774_v37 = vrot.slane %v773_v26, 1 }
 0x74d   :  { %v739_v0 = vrot.slane %v738_v16, 2 }
 0x74e   :  { %v775_v17 = vadd.f32 %v774_v37, %v773_v26  ;;  %v826_v26 = vmul.f32 %v806_v47, %v2007_v61 }
 0x74f   :  { %v808_v35 = vpop.f32.mrf.mxu2  ;;  %v740_v4 = vadd.f32 %v739_v0, %v738_v16 }
 0x750   :  { %v827_v13 = vmul.f32 %v808_v35, %v1999_v57 }
 0x751   :  { %v741_v1 = vrot.slane %v740_v4, 1 }
 0x752   :  { %v2341_v35 = vadd.f32 %v827_v13, %v2019_v51  ;;  %v2750_v13 = vld [vmem:[#allocation5_spill] sm:$0xff] }
 0x753   :  { %v742_v48 = vadd.f32 %v741_v1, %v740_v4 }
 0x755   :  { %1624 = vpush %v742_v48 }
 0x756   :  { %1626 = vpush %v775_v17 }
 0x757   :  { %v811_v25 = vpop.f32.mrf.mxu2 }
 0x758   :  { %v828_v20 = vmul.f32 %v811_v25, %v1939_v14 }
 0x75a   :  { %v2336_v0 = vadd.f32 %v828_v20, %v2005_v60 }
 0x75c   :  { %v844_v47 = vmul.f32 %v2336_v0, %v1838_v23 }
 0x75f   :  { %v813_v55 = vpop.f32.mrf.mxu2 }
 0x760   :  { %v829_v59 = vmul.f32 %v813_v55, %v1944_v27  ;;  %v2346_v55 = vadd.f32 %v826_v26, %v2027_v12 }
 0x762   :  { %v2328_v52 = vadd.f32 %v829_v59, %v1988_v41 }
 0x764   :  { %v845_v48 = vmul.f32 %v2328_v52, %v1874_v36 }
 0x767   :  { %v816_v8 = vpop.f32.mrf.mxu2 }
 0x768   :  { %v830_v2 = vmul.f32 %v816_v8, %v1935_v9 }
 0x76a   :  { %v2319_v18 = vadd.f32 %v830_v2, %v1974_v43 }
 0x76c   :  { %v846_v4 = vmul.f32 %v2319_v18, %v1836_v22 }
 0x76e   :  { %v854_v8 = vmul.f32 %v846_v4, %v846_v4 }
 0x76f   :  { %v818_v58 = vpop.f32.mrf.mxu2 }
 0x770   :  { %v831_v50 = vmul.f32 %v818_v58, %v1937_v11  ;;  %v843_v58 = vmul.f32 %v2341_v35, %v1890_v49 }
 0x772   :  { %v2314_v19 = vadd.f32 %v831_v50, %v1965_v28  ;;  %v2749_v50 = vld [vmem:[#allocation4_spill] sm:$0xff]  ;;  %v851_v59 = vmul.f32 %v843_v58, %v843_v58 }
 0x773   :  { %v842_v2 = vmul.f32 %v2346_v55, %v2749_v50 }
 0x774   :  { %v847_v15 = vmul.f32 %v2314_v19, %v1864_v30 }
 0x775   :  { %v850_v20 = vmul.f32 %v842_v2, %v842_v2 }
 0x776   :  { %v855_v17 = vmul.f32 %v847_v15, %v847_v15 }
 0x777   :  { %v821_v54 = vpop.f32.mrf.mxu2 }
 0x778   :  { %v832_v44 = vmul.f32 %v821_v54, %v1931_v6  ;;  %v853_v54 = vmul.f32 %v845_v48, %v845_v48 }
 0x77a   :  { %v2310_v21 = vadd.f32 %v832_v44, %v1955_v38  ;;  %v860_v44 = vpack.c.bf16 %v855_v17, %v854_v8 }
 0x77c   :  { %v848_v29 = vmul.f32 %v2310_v21, %v1840_v24 }
 0x77e   :  { %v856_v37 = vmul.f32 %v848_v29, %v848_v29  ;;  %v858_v29 = vpack.c.bf16 %v851_v59, %v850_v20 }
 0x77f   :  { %v823_v31 = vpop.f32.mrf.mxu2 }
 0x780   :  { %v833_v42 = vmul.f32 %v823_v31, %v1933_v7  ;;  %v852_v31 = vmul.f32 %v844_v47, %v844_v47 }
 0x782   :  { %v2324_v34 = vadd.f32 %v833_v42, %v1981_v45  ;;  %v859_v42 = vpack.c.bf16 %v853_v54, %v852_v31 }
 0x784   :  { %v849_v16 = vmul.f32 %v2324_v34, %v1868_v32 }
 0x786   :  { %v857_v1 = vmul.f32 %v849_v16, %v849_v16  ;;  %v2751_v16 = vld [vmem:[#allocation6_spill] sm:$0xff]  ;;  %s1625_s24 = spop %1624 }
 0x787   :  { %s1627_s25 = spop %1626 }
 0x788   :  { %v861_v25 = vpack.c.bf16 %v857_v1, %v856_v37  ;;  %v2752_v1 = vld [vmem:[#allocation7_spill] sm:$0xff] }
 0x78a   :  { %866 = vmatpush.bf16.msra.mxu0 %v861_v25 }
 0x78e   :  { %867 = vmatpush.bf16.msra.mxu0 %v860_v44 }
 0x792   :  { %868 = vmatpush.bf16.msra.mxu0 %v859_v42 }
 0x796   :  { %869 = vmatpush.bf16.msra.mxu0 %v858_v29 }
 0x799   :  { %1574 = vmatmul.msk.bf16.vlgmr.msra.gmra.mxu0 %vm173_vm0, %v2750_v13 }
 0x816   :  { %v871_v15 = vpop.f32.mrf.mxu0 }
 0x817   :  { %v876_v26 = vmul.f32 %v871_v15, %v2751_v16 }
 0x819   :  { %1664 = vrsqrt.f32 %v876_v26  ;;  %vm885_vm13 = vcmp.eq.f32.partialorder %v876_v26, inf  ;;  %v888_v29 = vand.u32 2147483648, %v876_v26  ;;  %vm887_vm14 = vcmp.eq.f32.partialorder %v876_v26, 0.0 }
 0x81e   :  { %v873_v4 = vpop.f32.mrf.mxu0 }
 0x81f   :  { %v1665_v37 = vpop.eup %1664  ;;  %v877_v48 = vmul.f32 %v873_v4, %v2752_v1 }
 0x820   :  { %v879_v17 = vmul.f32 %v1665_v37, %v876_v26 }
 0x821   :  { %1666 = vrsqrt.f32 %v877_v48  ;;  %vm897_vm15 = vcmp.eq.f32.partialorder %v877_v48, inf  ;;  %v900_v4 = vand.u32 2147483648, %v877_v48  ;;  %vm899_vm1 = vcmp.eq.f32.partialorder %v877_v48, 0.0 }
 0x822   :  { %v880_v25 = vmul.f32 %v1665_v37, %v879_v17 }
 0x824   :  { %v881_v47 = vmul.f32 0.5, %v880_v25 }
 0x826   :  { %v882_v8 = vsub.f32 1.5, %v881_v47 }
 0x827   :  { %v1667_v58 = vpop.eup %1666 }
 0x828   :  { %v883_v54 = vmul.f32 %v1665_v37, %v882_v8  ;;  %v891_v44 = vmul.f32 %v1667_v58, %v877_v48 }
 0x82a   :  { %v884_v2 = vmul.f32 %v883_v54, %v876_v26  ;;  %v892_v31 = vmul.f32 %v1667_v58, %v891_v44 }
 0x82c   :  { %v893_v59 = vmul.f32 0.5, %v892_v31  ;;  %v886_v42 = vsel %vm885_vm13, %v876_v26, %v884_v2 }
 0x82d   :  { %v889_v16 = vsel %vm887_vm14, %v888_v29, %v886_v42 }
 0x82e   :  { %v894_v20 = vsub.f32 1.5, %v893_v59  ;;  %v902_v17 = vmul.f32 %v889_v16, %v889_v16 }
 0x830   :  { %v895_v15 = vmul.f32 %v1667_v58, %v894_v20  ;;  %v904_v37 = vsel %vm229_vm5, %v902_v17, 0.0  ;;  %v744_v17 = vstv %s1625_s24 }
 0x832   :  { %v896_v13 = vmul.f32 %v895_v15, %v877_v48 }
 0x834   :  { %v898_v1 = vsel %vm897_vm15, %v877_v48, %v896_v13  ;;  %v777_v48 = vstv %s1627_s25 }
 0x835   :  { %v901_v25 = vsel %vm899_vm1, %v900_v4, %v898_v1  ;;  %v791_v29 = vmul.f32 1e-12, %v777_v48 }
 0x836   :  { %v903_v47 = vmul.f32 %v901_v25, %v901_v25 }
 0x837   :  { %vm792_vm2 = vcmp.lt.f32.partialorder %v744_v17, %v791_v29  ;;  %v2756_v17 = vld [vmem:[#allocation10_spill] sm:$0xff] }
 0x838   :  { %v905_v8 = vsel %vm229_vm5, %v903_v47, 0.0 }
 0x839   :  { %v906_v54 = vadd.f32 %v905_v8, %v904_v37  ;;  %v2753_v8 = vmov 0.0  }
 0x83b   :  { %907 = vadd.xlane.f32.xlu0 %v906_v54  ;;  %v1569_v54 = vsel %vm792_vm2, 1.0, %v2753_v8 }
 0x8ae   :  { %v908_v44 = vpop.xlane.xlu0 %907 }
 0x8af   :  { %v909_v2 = vrot.slane %v908_v44, 4 }
 0x8b1   :  { %v910_v31 = vadd.f32 %v909_v2, %v908_v44  ;;  %v2754_v2 = vld [vmem:[#allocation9_spill] sm:$0xff] }
 0x8b3   :  { %v911_v26 = vrot.slane %v910_v31, 2 }
 0x8b5   :  { %v912_v58 = vadd.f32 %v911_v26, %v910_v31  ;;  %v2755_v31 = vmax.f32 %v2754_v2, 0.0 }
 0x8b7   :  { %v913_v59 = vrot.slane %v912_v58, 1  ;;  %v2363_v26 = vmax.f32 %v2755_v31, %v1569_v54 }
 0x8b9   :  { %v914_v42 = vadd.f32 %v913_v59, %v912_v58  ;;  %vm1013_vm7 = vcmp.gt.f32.partialorder %v2363_v26, 0.0 }
 0x8bb   :  { %1628 = vpush %v914_v42 }
 0x8ec   :  { %s1629_s4 = spop %1628 }
 0x8ed   :  { %v916_v13 = vstv %s1629_s4 }
 0x8ee   :  { %v917_v1 = vmax.f32 %v916_v13, 1e-30 }
 0x8f0   :  { %1668 = vrsqrt.f32 %v917_v1  ;;  %vm924_vm4 = vweird.f32 %v917_v1 }
 0x8f6   :  { %v1669_v20 = vpop.eup %1668 }
 0x8f7   :  { %v919_v15 = vmul.f32 %v1669_v20, %v917_v1  ;;  %vm925_vm3 = vweird.f32 %v1669_v20 }
 0x8f8   :  { %vm926_vm6 = vmor %vm924_vm4, %vm925_vm3 }
 0x8f9   :  { %v920_v4 = vmul.f32 %v1669_v20, %v919_v15 }
 0x8fb   :  { %v921_v47 = vmul.f32 0.5, %v920_v4 }
 0x8fd   :  { %v922_v37 = vsub.f32 1.5, %v921_v47 }
 0x8ff   :  { %v923_v44 = vmul.f32 %v1669_v20, %v922_v37 }
 0x901   :  { %v927_v58 = vsel %vm926_vm6, %v1669_v20, %v923_v44  ;;  %v2757_v20 = vld [vmem:[#allocation11_spill] sm:$0xff] }
 0x902   :  { %v928_v59 = vmul.f32 0.5, %v927_v58 }
 0x904   :  { %v937_v42 = vmul.f32 %v928_v59, %v889_v16  ;;  %v938_v13 = vmul.f32 %v928_v59, %v901_v25  ;;  %v929_v48 = vmul.f32 %v928_v59, %v2346_v55  ;;  %v930_v29 = vmul.f32 %v928_v59, %v2341_v35 }
 0x905   :  { %v931_v15 = vmul.f32 %v928_v59, %v2336_v0  ;;  %v932_v4 = vmul.f32 %v928_v59, %v2328_v52  ;;  %v933_v1 = vmul.f32 %v928_v59, %v2319_v18  ;;  %v934_v55 = vmul.f32 %v928_v59, %v2314_v19 }
 0x906   :  { %v1024_v47 = vsel %vm1013_vm7, %v2756_v17, %v937_v42  ;;  %v1025_v16 = vsel %vm1013_vm7, %v2757_v20, %v938_v13  ;;  %v935_v35 = vmul.f32 %v928_v59, %v2310_v21  ;;  %v980_v37 = vmul.f32 %v929_v48, %v929_v48 }
 0x907   :  { %v1031_v25 = vpack.c.bf16 %v1025_v16, %v1024_v47  ;;  %v981_v54 = vmul.f32 %v930_v29, %v930_v29  ;;  %v982_v0 = vmul.f32 %v931_v15, %v931_v15  ;;  %v983_v52 = vmul.f32 %v932_v4, %v932_v4  ;;  %v1697_v47 = vld [vmem:[%s2707_s0] sm:$0xff] }
 0x908   :  { %v988_v18 = vsel %vm229_vm5, %v980_v37, 0.0  ;;  %v936_v2 = vmul.f32 %v928_v59, %v2324_v34  ;;  %v984_v31 = vmul.f32 %v933_v1, %v933_v1  ;;  %v985_v58 = vmul.f32 %v934_v55, %v934_v55 }
 0x909   :  { %1039 = vmatpush.bf16.msrb.mxu0 %v1031_v25  ;;  %v989_v44 = vsel %vm229_vm5, %v981_v54, 0.0  ;;  %v986_v13 = vmul.f32 %v935_v35, %v935_v35  ;;  %v991_v19 = vsel %vm229_vm5, %v982_v0, 0.0  ;;  %v939_v21 = vsub.f32 %v929_v48, %v2243_v3 }
 0x90a   :  { %v990_v42 = vadd.f32 %v989_v44, %v988_v18  ;;  %v940_v17 = vsub.f32 %v930_v29, %v2248_v39  ;;  %v941_v16 = vsub.f32 %v931_v15, %v2253_v40  ;;  %v942_v34 = vsub.f32 %v932_v4, %v2258_v10 }
 0x90b   :  { %v993_v59 = vsel %vm229_vm5, %v983_v52, 0.0  ;;  %v943_v25 = vsub.f32 %v933_v1, %v2263_v53  ;;  %v944_v37 = vsub.f32 %v934_v55, %v2268_v56  ;;  %v947_v54 = vmul.f32 %v939_v21, %v939_v21 }
 0x90c   :  { %1576 = vmatmul.msk.bf16.vlgmr.msrb.gmra.mxu0 %vm274_vm9, %v1697_v47  ;;  %v992_v20 = vadd.f32 %v991_v19, %v990_v42  ;;  %v948_v18 = vmul.f32 %v940_v17, %v940_v17  ;;  %v949_v44 = vmul.f32 %v941_v16, %v941_v16  ;;  %v950_v8 = vmul.f32 %v942_v34, %v942_v34 }
 0x90d   :  { %v987_v50 = vmul.f32 %v936_v2, %v936_v2  ;;  %v995_v49 = vsel %vm229_vm5, %v984_v31, 0.0  ;;  %v997_v42 = vsel %vm229_vm5, %v985_v58, 0.0  ;;  %v999_v19 = vsel %vm229_vm5, %v986_v13, 0.0 }
 0x90e   :  { %v994_v0 = vadd.f32 %v993_v59, %v992_v20  ;;  %v945_v23 = vsub.f32 %v935_v35, %v2273_v63  ;;  %v955_v52 = vsel %vm229_vm5, %v947_v54, 0.0  ;;  %v956_v12 = vsel %vm229_vm5, %v948_v18, 0.0 }
 0x90f   :  { %v946_v21 = vsub.f32 %v936_v2, %v2279_v62  ;;  %v951_v20 = vmul.f32 %v943_v25, %v943_v25  ;;  %v952_v17 = vmul.f32 %v944_v37, %v944_v37  ;;  %v957_v16 = vadd.f32 %v956_v12, %v955_v52 }
 0x910   :  { %v996_v47 = vadd.f32 %v995_v49, %v994_v0  ;;  %v958_v59 = vsel %vm229_vm5, %v949_v44, 0.0  ;;  %v960_v31 = vsel %vm229_vm5, %v950_v8, 0.0  ;;  %v2406_v49 = vsel %vm1013_vm7, %v2243_v3, %v929_v48 }
 0x911   :  { %v959_v58 = vadd.f32 %v958_v59, %v957_v16  ;;  %v2411_v13 = vsel %vm1013_vm7, %v2248_v39, %v930_v29  ;;  %v2416_v12 = vsel %vm1013_vm7, %v2253_v40, %v931_v15  ;;  %v2421_v8 = vsel %vm1013_vm7, %v2258_v10, %v932_v4 }
 0x912   :  { %v998_v34 = vadd.f32 %v997_v42, %v996_v47  ;;  %v2426_v3 = vsel %vm1013_vm7, %v2263_v53, %v933_v1  ;;  %v2431_v39 = vsel %vm1013_vm7, %v2268_v56, %v934_v55  ;;  %v2436_v40 = vsel %vm1013_vm7, %v2273_v63, %v935_v35 }
 0x913   :  { %v1001_v48 = vsel %vm229_vm5, %v987_v50, 0.0  ;;  %v961_v10 = vadd.f32 %v960_v31, %v959_v58  ;;  %v2442_v29 = vsel %vm1013_vm7, %v2279_v62, %v936_v2  ;;  %v953_v15 = vmul.f32 %v945_v23, %v945_v23 }
 0x914   :  { %v1000_v25 = vadd.f32 %v999_v19, %v998_v34  ;;  %v962_v4 = vsel %vm229_vm5, %v951_v20, 0.0  ;;  %v954_v56 = vmul.f32 %v946_v21, %v946_v21  ;;  %v964_v55 = vsel %vm229_vm5, %v952_v17, 0.0 }
 0x915   :  { %v963_v1 = vadd.f32 %v962_v4, %v961_v10  ;;  %v966_v63 = vsel %vm229_vm5, %v953_v15, 0.0 }
 0x916   :  { %v1002_v53 = vadd.f32 %v1001_v48, %v1000_v25  ;;  %v968_v50 = vsel %vm229_vm5, %v954_v56, 0.0 }
 0x917   :  { %v965_v37 = vadd.f32 %v964_v55, %v963_v1 }
 0x918   :  { %1003 = vadd.xlane.f32.xlu0 %v1002_v53 }
 0x919   :  { %v967_v35 = vadd.f32 %v966_v63, %v965_v37 }
 0x91b   :  { %v969_v62 = vadd.f32 %v968_v50, %v967_v35  ;;  %v2758_v35 = vld [vmem:[#allocation8_spill] sm:$0xff] }
 0x91c   :  { %1577 = vmatmul.msk.bf16.gmra.mxu0 %vm274_vm9, %v2288_v5 }
 0x91d   :  { %970 = vadd.xlane.f32.xlu1 %v969_v62  ;;  %v2760_v62 = vld [vmem:[#allocation3_spill] sm:$0xff] }
 0x92c   :  { %1578 = vmatmul.msk.bf16.gmra.mxu0 %vm274_vm9, %v2295_v46 }
 0x93c   :  { %1579 = vmatmul.msk.bf16.gmra.mxu0 %vm274_vm9, %v2302_v33 }
 0x989   :  { %v1041_v23 = vpop.f32.mrf.mxu0 }
 0x98b   :  { %v1004_v2 = vpop.xlane.xlu0 %1003 }
 0x98c   :  { %v1005_v54 = vrot.slane %v1004_v2, 4 }
 0x98e   :  { %v1006_v0 = vadd.f32 %v1005_v54, %v1004_v2 }
 0x990   :  { %v1007_v44 = vrot.slane %v1006_v0, 2  ;;  %v971_v42 = vpop.xlane.xlu1 %970 }
 0x991   :  { %v1043_v18 = vpop.f32.mrf.mxu0  ;;  %v972_v19 = vrot.slane %v971_v42, 4 }
 0x992   :  { %v1008_v52 = vadd.f32 %v1007_v44, %v1006_v0 }
 0x993   :  { %v973_v47 = vadd.f32 %v972_v19, %v971_v42  ;;  %v2762_v19 = vld [vmem:[#allocation5_spill] sm:$0xff] }
 0x994   :  { %v1009_v17 = vrot.slane %v1008_v52, 1 }
 0x995   :  { %v974_v21 = vrot.slane %v973_v47, 2 }
 0x996   :  { %v1010_v46 = vadd.f32 %v1009_v17, %v1008_v52  ;;  %v2763_v52 = vld [vmem:[#allocation6_spill] sm:$0xff]  ;;  %v2764_v17 = vld [vmem:[#allocation7_spill] sm:$0xff] }
 0x997   :  { %v975_v5 = vadd.f32 %v974_v21, %v973_v47 }
 0x999   :  { %v1046_v20 = vpop.f32.mrf.mxu0  ;;  %v976_v16 = vrot.slane %v975_v5, 1 }
 0x99a   :  { %v1063_v55 = vmul.f32 %v1046_v20, %v1939_v14  ;;  %v1061_v14 = vmul.f32 %v1041_v23, %v2007_v61  ;;  %v2759_v61 = vld [vmem:[#allocation2_spill] sm:$0xff] }
 0x99b   :  { %v977_v34 = vadd.f32 %v976_v16, %v975_v5 }
 0x99d   :  { %1630 = vpush %v977_v34 }
 0x99e   :  { %1632 = vpush %v1010_v46 }
 0x9a1   :  { %v1048_v33 = vpop.f32.mrf.mxu0 }
 0x9a2   :  { %v1064_v4 = vmul.f32 %v1048_v33, %v1944_v27 }
 0x9a4   :  { %v2476_v27 = vadd.f32 %v1064_v4, %v1988_v41 }
 0x9a6   :  { %v1080_v41 = vmul.f32 %v2476_v27, %v1874_v36 }
 0x9a8   :  { %v1088_v23 = vmul.f32 %v1080_v41, %v1080_v41 }
 0x9a9   :  { %v1051_v59 = vpop.f32.mrf.mxu0 }
 0x9aa   :  { %v1065_v10 = vmul.f32 %v1051_v59, %v1935_v9 }
 0x9ac   :  { %v2467_v37 = vadd.f32 %v1065_v10, %v1974_v43 }
 0x9b1   :  { %v1053_v31 = vpop.f32.mrf.mxu0 }
 0x9b2   :  { %v1066_v48 = vmul.f32 %v1053_v31, %v1937_v11  ;;  %v1062_v11 = vmul.f32 %v1043_v18, %v1999_v57 }
 0x9b4   :  { %v2462_v1 = vadd.f32 %v1066_v48, %v1965_v28  ;;  %v2484_v28 = vadd.f32 %v1063_v55, %v2005_v60  ;;  %v2489_v57 = vadd.f32 %v1062_v11, %v2019_v51  ;;  %v2761_v51 = vld [vmem:[#allocation4_spill] sm:$0xff] }
 0x9b6   :  { %v1079_v60 = vmul.f32 %v2484_v28, %v2759_v61 }
 0x9b8   :  { %v1087_v0 = vmul.f32 %v1079_v60, %v1079_v60 }
 0x9b9   :  { %v1056_v58 = vpop.f32.mrf.mxu0 }
 0x9ba   :  { %v1067_v25 = vmul.f32 %v1056_v58, %v1931_v6  ;;  %v1094_v18 = vpack.c.bf16 %v1088_v23, %v1087_v0 }
 0x9bc   :  { %v2458_v53 = vadd.f32 %v1067_v25, %v1955_v38  ;;  %v1082_v38 = vmul.f32 %v2462_v1, %v1864_v30 }
 0x9be   :  { %v1083_v6 = vmul.f32 %v2458_v53, %v1840_v24  ;;  %v1081_v24 = vmul.f32 %v2467_v37, %v1836_v22  ;;  %v1090_v30 = vmul.f32 %v1082_v38, %v1082_v38  ;;  %v1078_v22 = vmul.f32 %v2489_v57, %v2760_v62 }
 0x9c0   :  { %v1091_v43 = vmul.f32 %v1083_v6, %v1083_v6  ;;  %v1089_v50 = vmul.f32 %v1081_v24, %v1081_v24  ;;  %v1086_v36 = vmul.f32 %v1078_v22, %v1078_v22 }
 0x9c1   :  { %v1058_v15 = vpop.f32.mrf.mxu0 }
 0x9c2   :  { %v1068_v56 = vmul.f32 %v1058_v15, %v1933_v7  ;;  %v1095_v2 = vpack.c.bf16 %v1090_v30, %v1089_v50 }
 0x9c4   :  { %v2472_v9 = vadd.f32 %v1068_v56, %v1981_v45 }
 0x9c6   :  { %v1084_v7 = vmul.f32 %v2472_v9, %v1868_v32  ;;  %v2494_v32 = vadd.f32 %v1061_v14, %v2758_v35 }
 0x9c8   :  { %v1092_v45 = vmul.f32 %v1084_v7, %v1084_v7  ;;  %v1077_v54 = vmul.f32 %v2494_v32, %v2761_v51  ;;  %v1609_v51 = vld [vmem:[%s2710_s5] sm:$0xff] }
 0x9ca   :  { %v1096_v63 = vpack.c.bf16 %v1092_v45, %v1091_v43  ;;  %v1085_v44 = vmul.f32 %v1077_v54, %v1077_v54 }
 0x9cc   :  { %1101 = vmatpush.bf16.msra.mxu1 %v1096_v63  ;;  %v1093_v42 = vpack.c.bf16 %v1086_v36, %v1085_v44 }
 0x9ce   :  { %s1631_s12 = spop %1630 }
 0x9cf   :  { %s1633_s13 = spop %1632 }
 0x9d0   :  { %1102 = vmatpush.bf16.msra.mxu1 %v1095_v2  ;;  %v1610_v2 = vld [vmem:[%s2710_s5 + $0x8] sm:$0xff]  ;;  %v1012_v36 = vstv %s1633_s13 }
 0x9d1   :  { %1225 = vmatpush.bf16.msrb.mxu3 %v1610_v2  ;;  %v1700_v2 = vmov 32.0  }
 0x9d4   :  { %1103 = vmatpush.bf16.msra.mxu1 %v1094_v18  ;;  %v1026_v18 = vmul.f32 1e-12, %v1012_v36 }
 0x9d5   :  { %1226 = vmatpush.bf16.msrb.mxu3 %v1609_v51 }
 0x9d8   :  { %1104 = vmatpush.bf16.msra.mxu1 %v1093_v42 }
 0x9db   :  { %1580 = vmatmul.msk.bf16.vlgmr.msra.gmra.mxu1 %vm173_vm0, %v2762_v19  ;;  %v979_v19 = vstv %s1631_s12 }
 0x9dc   :  { %vm1027_vm11 = vcmp.lt.f32.partialorder %v979_v19, %v1026_v18 }
 0xa58   :  { %v1106_v47 = vpop.f32.mrf.mxu1 }
 0xa59   :  { %v1111_v21 = vmul.f32 %v1106_v47, %v2763_v52 }
 0xa5b   :  { %1670 = vrsqrt.f32 %v1111_v21  ;;  %vm1120_vm0 = vcmp.eq.f32.partialorder %v1111_v21, inf  ;;  %v1123_v55 = vand.u32 2147483648, %v1111_v21  ;;  %vm1122_vm9 = vcmp.eq.f32.partialorder %v1111_v21, 0.0 }
 0xa60   :  { %v1108_v5 = vpop.f32.mrf.mxu1 }
 0xa61   :  { %v1671_v20 = vpop.eup %1670  ;;  %v1112_v16 = vmul.f32 %v1108_v5, %v2764_v17 }
 0xa62   :  { %v1114_v34 = vmul.f32 %v1671_v20, %v1111_v21 }
 0xa63   :  { %1672 = vrsqrt.f32 %v1112_v16  ;;  %vm1132_vm8 = vcmp.eq.f32.partialorder %v1112_v16, inf  ;;  %v1135_v7 = vand.u32 2147483648, %v1112_v16  ;;  %vm1134_vm10 = vcmp.eq.f32.partialorder %v1112_v16, 0.0 }
 0xa64   :  { %v1115_v46 = vmul.f32 %v1671_v20, %v1114_v34 }
 0xa66   :  { %v1116_v33 = vmul.f32 0.5, %v1115_v46 }
 0xa68   :  { %v1117_v59 = vsub.f32 1.5, %v1116_v33 }
 0xa69   :  { %v1673_v31 = vpop.eup %1672 }
 0xa6a   :  { %v1118_v58 = vmul.f32 %v1671_v20, %v1117_v59  ;;  %v1126_v25 = vmul.f32 %v1673_v31, %v1112_v16 }
 0xa6c   :  { %v1119_v48 = vmul.f32 %v1118_v58, %v1111_v21  ;;  %v1127_v10 = vmul.f32 %v1673_v31, %v1126_v25 }
 0xa6e   :  { %v1128_v15 = vmul.f32 0.5, %v1127_v10  ;;  %v1121_v4 = vsel %vm1120_vm0, %v1111_v21, %v1119_v48  ;;  %v2765_v21 = vmov 0.0  }
 0xa6f   :  { %v1124_v11 = vsel %vm1122_vm9, %v1123_v55, %v1121_v4  ;;  %v1575_v5 = vsel %vm1027_vm11, 1.0, %v2765_v21 }
 0xa70   :  { %v1129_v56 = vsub.f32 1.5, %v1128_v15  ;;  %v1137_v24 = vmul.f32 %v1124_v11, %v1124_v11  ;;  %v1030_v17 = vmax.f32 %v2363_v26, %v1575_v5 }
 0xa72   :  { %v1130_v6 = vmul.f32 %v1673_v31, %v1129_v56  ;;  %v1139_v41 = vsel %vm229_vm5, %v1137_v24, 0.0  ;;  %vm2516_vm15 = vcmp.gt.f32.partialorder %v1030_v17, 0.0 }
 0xa74   :  { %v1131_v38 = vmul.f32 %v1130_v6, %v1112_v16 }
 0xa76   :  { %v1133_v14 = vsel %vm1132_vm8, %v1112_v16, %v1131_v38 }
 0xa77   :  { %v1136_v43 = vsel %vm1134_vm10, %v1135_v7, %v1133_v14 }
 0xa78   :  { %v1138_v45 = vmul.f32 %v1136_v43, %v1136_v43 }
 0xa7a   :  { %v1140_v30 = vsel %vm229_vm5, %v1138_v45, 0.0 }
 0xa7b   :  { %v1141_v63 = vadd.f32 %v1140_v30, %v1139_v41 }
 0xa7d   :  { %1142 = vadd.xlane.f32.xlu1 %v1141_v63 }
 0xaf0   :  { %v1143_v35 = vpop.xlane.xlu1 %1142 }
 0xaf1   :  { %v1144_v61 = vrot.slane %v1143_v35, 4 }
 0xaf3   :  { %v1145_v60 = vadd.f32 %v1144_v61, %v1143_v35 }
 0xaf5   :  { %v1146_v50 = vrot.slane %v1145_v60, 2 }
 0xaf7   :  { %v1147_v62 = vadd.f32 %v1146_v50, %v1145_v60 }
 0xaf9   :  { %v1148_v22 = vrot.slane %v1147_v62, 1 }
 0xafb   :  { %v1149_v23 = vadd.f32 %v1148_v22, %v1147_v62 }
 0xafd   :  { %1634 = vpush %v1149_v23 }
 0xb2e   :  { %s1635_s1 = spop %1634 }
 0xb2f   :  { %v1151_v54 = vstv %s1635_s1 }
 0xb30   :  { %v1152_v0 = vmax.f32 %v1151_v54, 1e-30 }
 0xb32   :  { %1674 = vrsqrt.f32 %v1152_v0  ;;  %vm1159_vm13 = vweird.f32 %v1152_v0 }
 0xb33   :  { %1676 = vrcp.f32 %v1700_v2 }
 0xb38   :  { %v1675_v44 = vpop.eup %1674 }
 0xb39   :  { %v1154_v42 = vmul.f32 %v1675_v44, %v1152_v0  ;;  %vm1160_vm12 = vweird.f32 %v1675_v44  ;;  %v1677_v51 = vpop.eup %1676 }
 0xb3a   :  { %vm1161_vm14 = vmor %vm1159_vm13, %vm1160_vm12  ;;  %v1281_v54 = vmul.f32 32.0, %v1677_v51  ;;  %vm1285_vm1 = vweird.f32 %v1677_v51 }
 0xb3b   :  { %v1155_v47 = vmul.f32 %v1675_v44, %v1154_v42 }
 0xb3c   :  { %v1282_v0 = vsub.f32 1.0, %v1281_v54 }
 0xb3d   :  { %v1156_v52 = vmul.f32 0.5, %v1155_v47 }
 0xb3e   :  { %v1283_v36 = vmul.f32 %v1677_v51, %v1282_v0 }
 0xb3f   :  { %v1157_v20 = vsub.f32 1.5, %v1156_v52 }
 0xb40   :  { %v1284_v18 = vadd.f32 %v1677_v51, %v1283_v36 }
 0xb41   :  { %v1158_v16 = vmul.f32 %v1675_v44, %v1157_v20 }
 0xb43   :  { %v1162_v34 = vsel %vm1161_vm14, %v1675_v44, %v1158_v16  ;;  %v2565_v44 = vsel %vm1285_vm1, %v1677_v51, %v1284_v18  ;;  %v1611_v51 = vld [vmem:[%s2713_s9] sm:$0xff] }
 0xb44   :  { %v1163_v46 = vmul.f32 0.5, %v1162_v34 }
 0xb46   :  { %v1164_v59 = vmul.f32 %v1163_v46, %v2494_v32  ;;  %v1165_v31 = vmul.f32 %v1163_v46, %v2489_v57  ;;  %v1166_v58 = vmul.f32 %v1163_v46, %v2484_v28  ;;  %v1167_v25 = vmul.f32 %v1163_v46, %v2476_v27 }
 0xb47   :  { %v1168_v48 = vmul.f32 %v1163_v46, %v2467_v37  ;;  %v1169_v26 = vmul.f32 %v1163_v46, %v2462_v1  ;;  %v1170_v10 = vmul.f32 %v1163_v46, %v2458_v53  ;;  %v1171_v15 = vmul.f32 %v1163_v46, %v2472_v9 }
 0xb48   :  { %v1175_v4 = vsel %vm2516_vm15, %v2406_v49, %v1164_v59  ;;  %v1176_v57 = vsel %vm2516_vm15, %v2411_v13, %v1165_v31  ;;  %v1177_v27 = vsel %vm2516_vm15, %v2416_v12, %v1166_v58  ;;  %v1178_v1 = vsel %vm2516_vm15, %v2421_v8, %v1167_v25 }
 0xb49   :  { %v1183_v37 = vpack.c.bf16 %v1176_v57, %v1175_v4  ;;  %v1184_v53 = vpack.c.bf16 %v1178_v1, %v1177_v27  ;;  %v1179_v9 = vsel %vm2516_vm15, %v2426_v3, %v1168_v48  ;;  %v1180_v49 = vsel %vm2516_vm15, %v2431_v39, %v1169_v26  ;;  %v1642_v3 = vld [vmem:[%s2709_s6] ss:$0 sm:$0xff] }
 0xb4a   :  { %v1185_v28 = vpack.c.bf16 %v1180_v49, %v1179_v9  ;;  %v1181_v13 = vsel %vm2516_vm15, %v2436_v40, %v1170_v10  ;;  %v1182_v12 = vsel %vm2516_vm15, %v2442_v29, %v1171_v15 }
 0xb4b   :  { %1589 = vmatmul.msk.bf16.vlgmr.msrb.gmra.mxu3 %vm229_vm5, %v1183_v37  ;;  %v1186_v8 = vpack.c.bf16 %v1182_v12, %v1181_v13 }
 0xb5b   :  { %1590 = vmatmul.msk.bf16.gmra.mxu3 %vm229_vm5, %v1184_v53 }
 0xb6b   :  { %1591 = vmatmul.msk.bf16.gmra.mxu3 %vm229_vm5, %v1185_v28 }
 0xb7b   :  { %1592 = vmatmul.msk.bf16.gmra.mxu3 %vm229_vm5, %v1186_v8 }
 0xbce   :  { %v1228_v39 = vpop.f32.mrf.mxu3 }
 0xbcf   :  { %v1229_v32 = vadd.f32 %v1642_v3, %v1228_v39 }
 0xbd1   :  { %v1248_v40 = vmax.f32 %v1229_v32, 0.0 }
 0xbd3   :  { %v1256_v56 = vsel %vm229_vm5, %v1248_v40, 0.0 }
 0xbd4   :  { %1257 = vadd.xlane.f32.xlu0 %v1256_v56 }
 0xbd6   :  { %v1230_v29 = vpop.f32.mrf.mxu3 }
 0xbd7   :  { %v1231_v55 = vadd.f32 %v1642_v3, %v1230_v29 }
 0xbd9   :  { %v1249_v6 = vmax.f32 %v1231_v55, 0.0 }
 0xbdb   :  { %v1259_v11 = vsel %vm229_vm5, %v1249_v6, 0.0 }
 0xbdc   :  { %1260 = vadd.xlane.f32.xlu1 %v1259_v11 }
 0xbde   :  { %v1233_v38 = vpop.f32.mrf.mxu3 }
 0xbdf   :  { %v1234_v7 = vadd.f32 %v1642_v3, %v1233_v38 }
 0xbe1   :  { %v1250_v14 = vmax.f32 %v1234_v7, 0.0 }
 0xbe3   :  { %v1262_v24 = vsel %vm229_vm5, %v1250_v14, 0.0 }
 0xbe4   :  { %1263 = vadd.xlane.f32.xlu0 %v1262_v24 }
 0xbe6   :  { %v1235_v43 = vpop.f32.mrf.mxu3 }
 0xbe7   :  { %v1236_v45 = vadd.f32 %v1642_v3, %v1235_v43 }
 0xbe9   :  { %v1251_v41 = vmax.f32 %v1236_v45, 0.0 }
 0xbeb   :  { %v1265_v30 = vsel %vm229_vm5, %v1251_v41, 0.0 }
 0xbec   :  { %1266 = vadd.xlane.f32.xlu1 %v1265_v30 }
 0xbee   :  { %v1238_v63 = vpop.f32.mrf.mxu3 }
 0xbef   :  { %v1239_v35 = vadd.f32 %v1642_v3, %v1238_v63 }
 0xbf1   :  { %v1252_v61 = vmax.f32 %v1239_v35, 0.0  ;;  %v1612_v35 = vld [vmem:[%s2713_s9 + $0x8] sm:$0xff] }
 0xbf2   :  { %1505 = vmatpush.bf16.msrb.mxu1 %v1612_v35 }
 0xbf3   :  { %v1268_v60 = vsel %vm229_vm5, %v1252_v61, 0.0 }
 0xbf4   :  { %1269 = vadd.xlane.f32.xlu0 %v1268_v60 }
 0xbf6   :  { %v1240_v50 = vpop.f32.mrf.mxu3  ;;  %1506 = vmatpush.bf16.msrb.mxu1 %v1611_v51 }
 0xbf7   :  { %v1241_v62 = vadd.f32 %v1642_v3, %v1240_v50 }
 0xbf9   :  { %v1253_v22 = vmax.f32 %v1241_v62, 0.0 }
 0xbfb   :  { %v1271_v23 = vsel %vm229_vm5, %v1253_v22, 0.0 }
 0xbfc   :  { %1272 = vadd.xlane.f32.xlu1 %v1271_v23 }
 0xbfe   :  { %v1243_v47 = vpop.f32.mrf.mxu3 }
 0xbff   :  { %v1244_v5 = vadd.f32 %v1642_v3, %v1243_v47 }
 0xc01   :  { %v1254_v34 = vmax.f32 %v1244_v5, 0.0 }
 0xc03   :  { %v1274_v25 = vsel %vm229_vm5, %v1254_v34, 0.0 }
 0xc06   :  { %v1245_v33 = vpop.f32.mrf.mxu3 }
 0xc07   :  { %v1246_v31 = vadd.f32 %v1642_v3, %v1245_v33 }
 0xc09   :  { %v1255_v10 = vmax.f32 %v1246_v31, 0.0  ;;  %v2630_v31 = vld [vmem:[%s2711_s7] ss:$0 sm:$0xff] }
 0xc0b   :  { %v1277_v57 = vsel %vm229_vm5, %v1255_v10, 0.0 }
 0xc47   :  { %v1258_v42 = vpop.xlane.xlu0 %1257 }
 0xc48   :  { %v1287_v19 = vmul.f32 %v2565_v44, %v1258_v42 }
 0xc4a   :  { %v2568_v52 = vsub.f32 %v1248_v40, %v1287_v19 }
 0xc4c   :  { %v1303_v21 = vmul.f32 %v2568_v52, %v2568_v52 }
 0xc4e   :  { %v1311_v20 = vsel %vm229_vm5, %v1303_v21, 0.0 }
 0xc4f   :  { %v1261_v17 = vpop.xlane.xlu1 %1260  ;;  %1312 = vadd.xlane.f32.xlu0 %v1311_v20 }
 0xc50   :  { %v1288_v16 = vmul.f32 %v2565_v44, %v1261_v17 }
 0xc52   :  { %v2574_v46 = vsub.f32 %v1249_v6, %v1288_v16 }
 0xc54   :  { %v1304_v59 = vmul.f32 %v2574_v46, %v2574_v46 }
 0xc56   :  { %v1314_v58 = vsel %vm229_vm5, %v1304_v59, 0.0 }
 0xc57   :  { %1315 = vadd.xlane.f32.xlu1 %v1314_v58  ;;  %1275 = vadd.xlane.f32.xlu0 %v1274_v25  ;;  %v1264_v48 = vpop.xlane.xlu0 %1263 }
 0xc58   :  { %v1289_v26 = vmul.f32 %v2565_v44, %v1264_v48 }
 0xc5a   :  { %v2581_v15 = vsub.f32 %v1250_v14, %v1289_v26 }
 0xc5c   :  { %v1305_v4 = vmul.f32 %v2581_v15, %v2581_v15 }
 0xc5e   :  { %v1317_v27 = vsel %vm229_vm5, %v1305_v4, 0.0 }
 0xc5f   :  { %1278 = vadd.xlane.f32.xlu1 %v1277_v57  ;;  %v1267_v1 = vpop.xlane.xlu1 %1266  ;;  %1318 = vadd.xlane.f32.xlu0 %v1317_v27  ;;  %v2636_v57 = vld [vmem:[%s2712_s8] ss:$0 sm:$0xff] }
 0xc60   :  { %v1290_v37 = vmul.f32 %v2565_v44, %v1267_v1 }
 0xc62   :  { %v2588_v53 = vsub.f32 %v1251_v41, %v1290_v37 }
 0xc64   :  { %v1306_v9 = vmul.f32 %v2588_v53, %v2588_v53 }
 0xc66   :  { %v1320_v49 = vsel %vm229_vm5, %v1306_v9, 0.0 }
 0xc67   :  { %1321 = vadd.xlane.f32.xlu1 %v1320_v49  ;;  %v1270_v28 = vpop.xlane.xlu0 %1269 }
 0xc68   :  { %v1291_v13 = vmul.f32 %v2565_v44, %v1270_v28 }
 0xc6a   :  { %v2594_v12 = vsub.f32 %v1252_v61, %v1291_v13 }
 0xc6c   :  { %v1307_v8 = vmul.f32 %v2594_v12, %v2594_v12 }
 0xc6e   :  { %v1323_v3 = vsel %vm229_vm5, %v1307_v8, 0.0 }
 0xc6f   :  { %v1273_v39 = vpop.xlane.xlu1 %1272  ;;  %1324 = vadd.xlane.f32.xlu0 %v1323_v3 }
 0xc70   :  { %v1292_v32 = vmul.f32 %v2565_v44, %v1273_v39 }
 0xc72   :  { %v2600_v40 = vsub.f32 %v1253_v22, %v1292_v32 }
 0xc74   :  { %v1308_v56 = vmul.f32 %v2600_v40, %v2600_v40 }
 0xc76   :  { %v1326_v29 = vsel %vm229_vm5, %v1308_v56, 0.0 }
 0xc77   :  { %1327 = vadd.xlane.f32.xlu1 %v1326_v29 }
 0xcc2   :  { %v1313_v55 = vpop.xlane.xlu0 %1312 }
 0xcc3   :  { %v1335_v6 = vmul.f32 %v1313_v55, %v2565_v44 }
 0xcc5   :  { %v1343_v11 = vadd.f32 1e-05, %v1335_v6 }
 0xcc7   :  { %1678 = vrsqrt.f32 %v1343_v11  ;;  %vm1357_vm3 = vweird.f32 %v1343_v11 }
 0xcca   :  { %v1316_v38 = vpop.xlane.xlu1 %1315  ;;  %v1276_v7 = vpop.xlane.xlu0 %1275 }
 0xccb   :  { %v1336_v14 = vmul.f32 %v1316_v38, %v2565_v44  ;;  %v1293_v24 = vmul.f32 %v2565_v44, %v1276_v7 }
 0xccd   :  { %v1679_v43 = vpop.eup %1678  ;;  %v1344_v45 = vadd.f32 1e-05, %v1336_v14  ;;  %v2608_v41 = vsub.f32 %v1254_v34, %v1293_v24 }
 0xcce   :  { %v1352_v30 = vmul.f32 %v1679_v43, %v1343_v11  ;;  %vm1358_vm2 = vweird.f32 %v1679_v43 }
 0xccf   :  { %1680 = vrsqrt.f32 %v1344_v45  ;;  %v1309_v63 = vmul.f32 %v2608_v41, %v2608_v41  ;;  %vm1359_vm4 = vmor %vm1357_vm3, %vm1358_vm2  ;;  %vm1367_vm7 = vweird.f32 %v1344_v45 }
 0xcd0   :  { %v1353_v61 = vmul.f32 %v1679_v43, %v1352_v30 }
 0xcd1   :  { %v1329_v60 = vsel %vm229_vm5, %v1309_v63, 0.0 }
 0xcd2   :  { %v1354_v50 = vmul.f32 0.5, %v1353_v61  ;;  %v1279_v62 = vpop.xlane.xlu1 %1278  ;;  %1330 = vadd.xlane.f32.xlu2 %v1329_v60  ;;  %v1319_v22 = vpop.xlane.xlu0 %1318 }
 0xcd3   :  { %v1294_v23 = vmul.f32 %v2565_v44, %v1279_v62  ;;  %v1337_v2 = vmul.f32 %v1319_v22, %v2565_v44 }
 0xcd4   :  { %v1355_v54 = vsub.f32 1.5, %v1354_v50 }
 0xcd5   :  { %v1681_v0 = vpop.eup %1680  ;;  %v2621_v36 = vsub.f32 %v1255_v10, %v1294_v23  ;;  %v1345_v18 = vadd.f32 1e-05, %v1337_v2 }
 0xcd6   :  { %v1356_v42 = vmul.f32 %v1679_v43, %v1355_v54  ;;  %v1362_v19 = vmul.f32 %v1681_v0, %v1344_v45  ;;  %vm1368_vm6 = vweird.f32 %v1681_v0 }
 0xcd7   :  { %1682 = vrsqrt.f32 %v1345_v18  ;;  %v1310_v47 = vmul.f32 %v2621_v36, %v2621_v36  ;;  %vm1369_vm0 = vmor %vm1367_vm7, %vm1368_vm6  ;;  %vm1377_vm8 = vweird.f32 %v1345_v18 }
 0xcd8   :  { %v1363_v21 = vmul.f32 %v1681_v0, %v1362_v19  ;;  %v1360_v20 = vsel %vm1359_vm4, %v1679_v43, %v1356_v42 }
 0xcd9   :  { %v1332_v5 = vsel %vm229_vm5, %v1310_v47, 0.0  ;;  %v1431_v58 = vmul.f32 %v1360_v20, %v2568_v52 }
 0xcda   :  { %v1364_v17 = vmul.f32 0.5, %v1363_v21  ;;  %v1322_v16 = vpop.xlane.xlu1 %1321  ;;  %1333 = vadd.xlane.f32.xlu0 %v1332_v5 }
 0xcdb   :  { %v1338_v34 = vmul.f32 %v1322_v16, %v2565_v44  ;;  %v1443_v27 = vmul.f32 %v2630_v31, %v1431_v58 }
 0xcdc   :  { %v1365_v33 = vsub.f32 1.5, %v1364_v17 }
 0xcdd   :  { %v1683_v59 = vpop.eup %1682  ;;  %v1346_v25 = vadd.f32 1e-05, %v1338_v34  ;;  %v1455_v8 = vadd.f32 %v2636_v57, %v1443_v27 }
 0xcde   :  { %v1366_v48 = vmul.f32 %v1681_v0, %v1365_v33  ;;  %v1372_v26 = vmul.f32 %v1683_v59, %v1345_v18  ;;  %vm1378_vm9 = vweird.f32 %v1683_v59 }
 0xcdf   :  { %1684 = vrsqrt.f32 %v1346_v25  ;;  %vm1379_vm10 = vmor %vm1377_vm8, %vm1378_vm9  ;;  %vm1387_vm12 = vweird.f32 %v1346_v25 }
 0xce0   :  { %v1370_v10 = vsel %vm1369_vm0, %v1681_v0, %v1366_v48  ;;  %v1373_v4 = vmul.f32 %v1683_v59, %v1372_v26 }
 0xce1   :  { %v1432_v1 = vmul.f32 %v1370_v10, %v2574_v46 }
 0xce2   :  { %v1374_v37 = vmul.f32 0.5, %v1373_v4  ;;  %v1325_v9 = vpop.xlane.xlu0 %1324 }
 0xce3   :  { %v1444_v52 = vmul.f32 %v2630_v31, %v1432_v1  ;;  %v1339_v49 = vmul.f32 %v1325_v9, %v2565_v44 }
 0xce4   :  { %v1375_v28 = vsub.f32 1.5, %v1374_v37 }
 0xce5   :  { %v1685_v13 = vpop.eup %1684  ;;  %v1456_v3 = vadd.f32 %v2636_v57, %v1444_v52  ;;  %v1347_v39 = vadd.f32 1e-05, %v1339_v49 }
 0xce6   :  { %v1376_v32 = vmul.f32 %v1683_v59, %v1375_v28  ;;  %v1382_v56 = vmul.f32 %v1685_v13, %v1346_v25  ;;  %vm1388_vm11 = vweird.f32 %v1685_v13 }
 0xce7   :  { %1686 = vrsqrt.f32 %v1347_v39  ;;  %v1463_v29 = vpack.c.bf16 %v1456_v3, %v1455_v8  ;;  %vm1389_vm13 = vmor %vm1387_vm12, %vm1388_vm11  ;;  %vm1397_vm15 = vweird.f32 %v1347_v39  ;;  %vm1528_vm11 = vcmask 64512  }
 0xce8   :  { %v1383_v46 = vmul.f32 %v1685_v13, %v1382_v56  ;;  %v1380_v55 = vsel %vm1379_vm10, %v1683_v59, %v1376_v32  ;;  %v1645_v56 = vld [vmem:[%s2714_s10] ss:$0 sm:$0xff] }
 0xce9   :  { %1601 = vmatmul.msk.bf16.vlgmr.msrb.gmra.mxu1 %vm229_vm5, %v1463_v29  ;;  %v1433_v24 = vmul.f32 %v1380_v55, %v2581_v15 }
 0xcea   :  { %v1384_v6 = vmul.f32 0.5, %v1383_v46  ;;  %v1328_v11 = vpop.xlane.xlu1 %1327 }
 0xceb   :  { %v1340_v38 = vmul.f32 %v1328_v11, %v2565_v44  ;;  %v1445_v60 = vmul.f32 %v2630_v31, %v1433_v24 }
 0xcec   :  { %v1385_v7 = vsub.f32 1.5, %v1384_v6 }
 0xced   :  { %v1687_v14 = vpop.eup %1686  ;;  %v1348_v43 = vadd.f32 1e-05, %v1340_v38  ;;  %v1457_v2 = vadd.f32 %v2636_v57, %v1445_v60 }
 0xcee   :  { %v1386_v45 = vmul.f32 %v1685_v13, %v1385_v7  ;;  %v1392_v30 = vmul.f32 %v1687_v14, %v1347_v39  ;;  %vm1398_vm14 = vweird.f32 %v1687_v14 }
 0xcef   :  { %1688 = vrsqrt.f32 %v1348_v43  ;;  %vm1399_vm1 = vmor %vm1397_vm15, %vm1398_vm14  ;;  %vm1407_vm3 = vweird.f32 %v1348_v43 }
 0xcf0   :  { %v1390_v63 = vsel %vm1389_vm13, %v1685_v13, %v1386_v45  ;;  %v1393_v35 = vmul.f32 %v1687_v14, %v1392_v30 }
 0xcf1   :  { %v1434_v61 = vmul.f32 %v1390_v63, %v2588_v53 }
 0xcf2   :  { %v1394_v50 = vmul.f32 0.5, %v1393_v35 }
 0xcf3   :  { %v1446_v62 = vmul.f32 %v2630_v31, %v1434_v61 }
 0xcf4   :  { %v1395_v22 = vsub.f32 1.5, %v1394_v50 }
 0xcf5   :  { %v1689_v23 = vpop.eup %1688  ;;  %v1458_v15 = vadd.f32 %v2636_v57, %v1446_v62 }
 0xcf6   :  { %v1396_v51 = vmul.f32 %v1687_v14, %v1395_v22  ;;  %v1402_v54 = vmul.f32 %v1689_v23, %v1348_v43  ;;  %vm1408_vm2 = vweird.f32 %v1689_v23 }
 0xcf7   :  { %v1464_v0 = vpack.c.bf16 %v1458_v15, %v1457_v2  ;;  %vm1409_vm4 = vmor %vm1407_vm3, %vm1408_vm2 }
 0xcf8   :  { %v1403_v18 = vmul.f32 %v1689_v23, %v1402_v54  ;;  %v1400_v53 = vsel %vm1399_vm1, %v1687_v14, %v1396_v51 }
 0xcf9   :  { %1602 = vmatmul.msk.bf16.gmra.mxu1 %vm229_vm5, %v1464_v0  ;;  %v1435_v47 = vmul.f32 %v1400_v53, %v2594_v12 }
 0xcfa   :  { %v1404_v42 = vmul.f32 0.5, %v1403_v18 }
 0xcfb   :  { %v1447_v17 = vmul.f32 %v2630_v31, %v1435_v47 }
 0xcfc   :  { %v1405_v19 = vsub.f32 1.5, %v1404_v42 }
 0xcfd   :  { %v1459_v34 = vadd.f32 %v2636_v57, %v1447_v17 }
 0xcfe   :  { %v1406_v21 = vmul.f32 %v1689_v23, %v1405_v19 }
 0xd00   :  { %v1410_v5 = vsel %vm1409_vm4, %v1689_v23, %v1406_v21 }
 0xd01   :  { %v1436_v20 = vmul.f32 %v1410_v5, %v2600_v40 }
 0xd03   :  { %v1448_v16 = vmul.f32 %v2630_v31, %v1436_v20 }
 0xd05   :  { %v1460_v33 = vadd.f32 %v2636_v57, %v1448_v16 }
 0xd07   :  { %v1465_v59 = vpack.c.bf16 %v1460_v33, %v1459_v34 }
 0xd09   :  { %1603 = vmatmul.msk.bf16.gmra.mxu1 %vm229_vm5, %v1465_v59 }
 0xd45   :  { %v1331_v58 = vpop.xlane.xlu2 %1330 }
 0xd46   :  { %v1341_v12 = vmul.f32 %v1331_v58, %v2565_v44 }
 0xd48   :  { %v1349_v25 = vadd.f32 1e-05, %v1341_v12 }
 0xd4a   :  { %1690 = vrsqrt.f32 %v1349_v25  ;;  %vm1417_vm7 = vweird.f32 %v1349_v25 }
 0xd4d   :  { %v1334_v48 = vpop.xlane.xlu0 %1333 }
 0xd4e   :  { %v1342_v26 = vmul.f32 %v1334_v48, %v2565_v44 }
 0xd50   :  { %v1691_v40 = vpop.eup %1690  ;;  %v1350_v10 = vadd.f32 1e-05, %v1342_v26 }
 0xd51   :  { %v1412_v4 = vmul.f32 %v1691_v40, %v1349_v25  ;;  %vm1418_vm6 = vweird.f32 %v1691_v40 }
 0xd52   :  { %1692 = vrsqrt.f32 %v1350_v10  ;;  %vm1419_vm0 = vmor %vm1417_vm7, %vm1418_vm6  ;;  %vm1427_vm8 = vweird.f32 %v1350_v10 }
 0xd53   :  { %v1413_v27 = vmul.f32 %v1691_v40, %v1412_v4 }
 0xd55   :  { %v1414_v1 = vmul.f32 0.5, %v1413_v27 }
 0xd57   :  { %v1415_v37 = vsub.f32 1.5, %v1414_v1 }
 0xd58   :  { %v1693_v9 = vpop.eup %1692 }
 0xd59   :  { %v1416_v52 = vmul.f32 %v1691_v40, %v1415_v37  ;;  %v1422_v49 = vmul.f32 %v1693_v9, %v1350_v10  ;;  %vm1428_vm9 = vweird.f32 %v1693_v9 }
 0xd5a   :  { %vm1429_vm10 = vmor %vm1427_vm8, %vm1428_vm9 }
 0xd5b   :  { %v1423_v28 = vmul.f32 %v1693_v9, %v1422_v49  ;;  %v1420_v13 = vsel %vm1419_vm0, %v1691_v40, %v1416_v52 }
 0xd5c   :  { %v1437_v44 = vmul.f32 %v1420_v13, %v2608_v41 }
 0xd5d   :  { %v1424_v8 = vmul.f32 0.5, %v1423_v28 }
 0xd5e   :  { %v1449_v46 = vmul.f32 %v2630_v31, %v1437_v44 }
 0xd5f   :  { %v1425_v3 = vsub.f32 1.5, %v1424_v8 }
 0xd60   :  { %v1461_v38 = vadd.f32 %v2636_v57, %v1449_v46 }
 0xd61   :  { %v1426_v39 = vmul.f32 %v1693_v9, %v1425_v3 }
 0xd63   :  { %v1430_v32 = vsel %vm1429_vm10, %v1693_v9, %v1426_v39 }
 0xd64   :  { %v1438_v29 = vmul.f32 %v1430_v32, %v2621_v36 }
 0xd66   :  { %v1508_v55 = vpop.f32.mrf.mxu1  ;;  %v1450_v6 = vmul.f32 %v2630_v31, %v1438_v29 }
 0xd67   :  { %v1509_v11 = vadd.f32 %v1645_v56, %v1508_v55 }
 0xd68   :  { %v1462_v41 = vadd.f32 %v2636_v57, %v1450_v6 }
 0xd69   :  { %1529 = vst.msk [vmem:[%s2715_s11] sm:$0xff] %vm1528_vm11, %v1509_v11 }
 0xd6a   :  { %v1466_v7 = vpack.c.bf16 %v1462_v41, %v1461_v38 }
 0xd6c   :  { %1604 = vmatmul.msk.bf16.gmra.mxu1 %vm229_vm5, %v1466_v7 }
 0xd6e   :  { %v1510_v36 = vpop.f32.mrf.mxu1 }
 0xd6f   :  { %v1511_v14 = vadd.f32 %v1645_v56, %v1510_v36 }
 0xd71   :  { %1530 = vst.msk [vmem:[%s2715_s11 + $0x8] sm:$0xff] %vm1528_vm11, %v1511_v14 }
 0xd76   :  { %v1513_v31 = vpop.f32.mrf.mxu1 }
 0xd77   :  { %v1514_v24 = vadd.f32 %v1645_v56, %v1513_v31 }
 0xd79   :  { %1531 = vst.msk [vmem:[%s2715_s11 + $0x10] sm:$0xff] %vm1528_vm11, %v1514_v24 }
 0xd7e   :  { %v1515_v57 = vpop.f32.mrf.mxu1 }
 0xd7f   :  { %v1516_v43 = vadd.f32 %v1645_v56, %v1515_v57 }
 0xd81   :  { %1532 = vst.msk [vmem:[%s2715_s11 + $0x18] sm:$0xff] %vm1528_vm11, %v1516_v43 }
 0xd86   :  { %v1518_v45 = vpop.f32.mrf.mxu1 }
 0xd87   :  { %v1519_v30 = vadd.f32 %v1645_v56, %v1518_v45 }
 0xd89   :  { %1533 = vst.msk [vmem:[%s2715_s11 + $0x20] sm:$0xff] %vm1528_vm11, %v1519_v30 }
 0xd8e   :  { %v1520_v63 = vpop.f32.mrf.mxu1 }
 0xd8f   :  { %v1521_v35 = vadd.f32 %v1645_v56, %v1520_v63 }
 0xd91   :  { %1534 = vst.msk [vmem:[%s2715_s11 + $0x28] sm:$0xff] %vm1528_vm11, %v1521_v35 }
 0xde9   :  { %v1523_v61 = vpop.f32.mrf.mxu1 }
 0xdea   :  { %v1524_v60 = vadd.f32 %v1645_v56, %v1523_v61 }
 0xdec   :  { %1535 = vst.msk [vmem:[%s2715_s11 + $0x30] sm:$0xff] %vm1528_vm11, %v1524_v60 }
 0xdf1   :  { %v1525_v50 = vpop.f32.mrf.mxu1 }
 0xdf2   :  { %v1526_v62 = vadd.f32 %v1645_v56, %v1525_v50 }
 0xdf4   :  { %1536 = vst.msk [vmem:[%s2715_s11 + $0x38] sm:$0xff] %vm1528_vm11, %v1526_v62 }

</bundles_post_ra>
